<compile_context>
chip_gen: v6e
topology: v6e:2x2x1
jax: 0.10.0
libtpu: 0.0.40
codegen_flags: <defaults>
</compile_context>

<pallas_src>
import jax
import jax.numpy as jnp
from jax import lax
from jax.experimental import pallas as pl
from jax.experimental.pallas import tpu as pltpu

LANES = 128
SUBLANES = 8


def _round_up(x, m):
    return ((x + m - 1) // m) * m


# --------------------------------- kernel ------------------------------------

def inter_encoder_kernel(
    # node-axis-tiled inputs (streamed over the grid)
    x_ref,                # [tile_n, HP] f32   clean stacked node features [road; poi]
    road_m_ref,           # [tile_n, 1]  f32   1.0 at masked road rows
    poi_m_ref,            # [tile_n, 1]  f32   1.0 at masked poi rows
    b_ref,                # [tile_n, Ne] bf16  incidence rows
    b_rmask_cols_ref,     # [tile_n, NMRp] bf16 incidence columns at masked regions
    # grid-resident inputs (constant index_map -> DMA'd once)
    region_ref,           # [Ne, HP] f32       clean region (hyperedge) features
    road_tok_ref,         # [1, HP] f32
    poi_tok_ref,          # [1, HP] f32
    region_tok_ref,       # [1, HP] f32
    b_nmask_rows_ref,     # [NMNp, Ne] bf16    incidence rows at masked nodes
    tok_sel_ref,          # [NMNp, 1] f32      1.0 -> road token row, 0.0 -> poi token row
    inv_deg_e_ref,        # [Ne, 1] f32
    inv_deg_e_mask_ref,   # [NMRp, 1] f32
    inv_deg_n_mask_ref,   # [NMNp, 1] f32
    we_ref, wn_ref,       # [HP, HP] bf16      hyper-encoder projections
    w1_ref, b1_ref,       # MLP decoder (w bf16, b f32)
    w2_ref, b2_ref,
    # outputs
    node_res_ref,         # [NMNp, HP] f32     decoded masked road+poi rows
    region_res_ref,       # [NMRp, HP] f32     decoded masked region rows
    # scratch accumulators
    agg_e_acc,            # [Ne, HP] f32
    agg2_acc,             # [NMRp, HP] f32
):
    f32 = jnp.float32
    bf16 = jnp.bfloat16
    TN = (((0,), (0,)), ((), ()))   # contract dim 0 of both operands  (== lhs.T @ rhs)

    @pl.when(pl.program_id(0) == 0)
    def _():
        agg_e_acc[...] = jnp.zeros_like(agg_e_acc)
        agg2_acc[...] = jnp.zeros_like(agg2_acc)

    x = x_ref[...]
    # encoding_mask_noise fused: masked rows become exactly their type's mask token.
    x_masked = jnp.where(road_m_ref[...] > 0.0, road_tok_ref[...],
                         jnp.where(poi_m_ref[...] > 0.0, poi_tok_ref[...], x))

    # pass-1 node->edge aggregation  B^T @ X_masked  (accumulated over node tiles)
    agg_e_acc[...] += lax.dot_general(b_ref[...], x_masked.astype(bf16), TN,
                                      preferred_element_type=f32)
    # pass-2 node->edge aggregation restricted to the masked hyperedge columns
    agg2_acc[...] += lax.dot_general(b_rmask_cols_ref[...], x.astype(bf16), TN,
                                     preferred_element_type=f32)

    @pl.when(pl.program_id(0) == pl.num_programs(0) - 1)
    def _():
        we, wn = we_ref[...], wn_ref[...]
        w1, b1 = w1_ref[...], b1_ref[...]
        w2, b2 = w2_ref[...], b2_ref[...]

        def elu(v):
            return jnp.where(v > 0.0, v, jnp.exp(jnp.minimum(v, 0.0)) - 1.0)

        def l2n(v, eps=1e-12):
            # torch F.normalize(p=2, dim=1): x / max(||x||, eps) == x * rsqrt(max(||x||^2, eps^2))
            n2 = jnp.sum(v * v, axis=-1, keepdims=True)
            return v * lax.rsqrt(jnp.maximum(n2, eps * eps))

        def decode(v):
            h = elu(jnp.dot(v.astype(bf16), w1, preferred_element_type=f32) + b1)
            return jnp.dot(h.astype(bf16), w2, preferred_element_type=f32) + b2

        # ---- pass 1: hyperedge update over ALL edges (clean region features) ----
        e1 = elu(jnp.dot((agg_e_acc[...] * inv_deg_e_ref[...] + region_ref[...]).astype(bf16),
                         we, preferred_element_type=f32))

        # ---- pass 1: edge->node only at masked node rows (the only rows decoded) ----
        n_agg = jnp.dot(b_nmask_rows_ref[...], e1.astype(bf16),
                        preferred_element_type=f32) * inv_deg_n_mask_ref[...]
        # masked node rows of x_masked are exactly the mask token of their type
        tok_rows = jnp.where(tok_sel_ref[...] > 0.0, road_tok_ref[...], poi_tok_ref[...])
        node_z1 = l2n(elu(jnp.dot((n_agg + tok_rows).astype(bf16), wn,
                                  preferred_element_type=f32)))

        # ---- pass 2: clean nodes -> masked hyperedges (edge feature = region token) ----
        region_z2 = l2n(elu(jnp.dot((agg2_acc[...] * inv_deg_e_mask_ref[...]
                                     + region_tok_ref[...]).astype(bf16),
                                    we, preferred_element_type=f32)))

        node_res_ref[...] = decode(node_z1)
        region_res_ref[...] = decode(region_z2)


# --------------------------------- wrapper ------------------------------------

def _pad_lanes(x, hp):
    h = x.shape[-1]
    if h == hp:
        return x
    return jnp.pad(x, [(0, 0)] * (x.ndim - 1) + [(0, hp - h)])


def _pad_square(w, hp):
    return jnp.pad(w, ((0, hp - w.shape[0]), (0, hp - w.shape[1])))


def inter_encoder_forward(params, data, key, mask_rate=0.3, tile_n=32):
    f32, bf16 = jnp.float32, jnp.bfloat16
    poi_x = data["poi_embedding"]
    road_x = data["road_embedding"]
    region_x = data["region_embedding"]
    hid_dim = poi_x.shape[-1]
    hp = _round_up(hid_dim, LANES)

    num_poi, num_road, num_region = poi_x.shape[0], road_x.shape[0], region_x.shape[0]
    num_nodes = num_road + num_poi

    # ---- randperm mask-index generation (glue, like torch.randperm) ----
    k_poi, k_road, k_region = jax.random.split(key, 3)

    def mask_indices(k, n):
        perm = jax.random.permutation(k, n)
        num_mask = int(mask_rate * n)
        return perm[:num_mask], num_mask

    mask_poi_idx, n_mask_poi = mask_indices(k_poi, num_poi)
    mask_road_idx, n_mask_road = mask_indices(k_road, num_road)
    mask_region_idx, n_mask_region = mask_indices(k_region, num_region)

    # ---- stacked node features (torch.cat((road, poi))) and mask columns ----
    x_nodes = jnp.concatenate([road_x, poi_x], axis=0)                      # [Nn, hid]
    road_mask_col = jnp.zeros((num_nodes, 1), f32).at[mask_road_idx, 0].set(1.0)
    poi_mask_col = jnp.zeros((num_nodes, 1), f32).at[num_road + mask_poi_idx, 0].set(1.0)

    # ---- dense incidence (single copy, bf16 is exact for {0,1}) ----
    hidx = data["hyperedge_index"]
    incidence = jnp.zeros((num_nodes, num_region), f32).at[hidx[0], hidx[1]].set(1.0)
    deg_e = jnp.sum(incidence, axis=0)                                      # [Ne]
    deg_n = jnp.sum(incidence, axis=1)                                      # [Nn]
    inv_deg_e = (1.0 / jnp.maximum(deg_e, 1.0)).reshape(num_region, 1)

    # ---- masked-row metadata (exact precompute; indices stay in the wrapper) ----
    node_mask_idx = jnp.concatenate([mask_road_idx, num_road + mask_poi_idx])
    n_mask_nodes = n_mask_road + n_mask_poi
    nmn_pad = _round_up(max(n_mask_nodes, 1), SUBLANES)
    nmr_pad = _round_up(max(n_mask_region, 1), SUBLANES)

    b_nmask_rows = jnp.pad(jnp.take(incidence, node_mask_idx, axis=0),
                           ((0, nmn_pad - n_mask_nodes), (0, 0))).astype(bf16)
    inv_deg_n_mask = jnp.pad(
        (1.0 / jnp.maximum(jnp.take(deg_n, node_mask_idx), 1.0)).reshape(-1, 1),
        ((0, nmn_pad - n_mask_nodes), (0, 0)), constant_values=1.0)
    tok_sel = jnp.pad(jnp.ones((n_mask_road, 1), f32),
                      ((0, nmn_pad - n_mask_road), (0, 0)))                 # 1=road, 0=poi/pad

    b_rmask_cols = jnp.pad(jnp.take(incidence, mask_region_idx, axis=1),
                           ((0, 0), (0, nmr_pad - n_mask_region))).astype(bf16)
    inv_deg_e_mask = jnp.pad(
        (1.0 / jnp.maximum(jnp.take(deg_e, mask_region_idx), 1.0)).reshape(-1, 1),
        ((0, nmr_pad - n_mask_region), (0, 0)), constant_values=1.0)

    # ---- pad the node axis to a multiple of tile_n (zero rows are inert) ----
    nn_pad = _round_up(num_nodes, tile_n)
    pad_n = nn_pad - num_nodes
    x_nodes_p = jnp.pad(_pad_lanes(x_nodes, hp), ((0, pad_n), (0, 0)))
    road_mask_col = jnp.pad(road_mask_col, ((0, pad_n), (0, 0)))
    poi_mask_col = jnp.pad(poi_mask_col, ((0, pad_n), (0, 0)))
    b_nodes = jnp.pad(incidence, ((0, pad_n), (0, 0))).astype(bf16)
    b_rmask_cols = jnp.pad(b_rmask_cols, ((0, pad_n), (0, 0)))

    dec, hyp = params["decoder"], params["hyper"]
    args = (
        x_nodes_p, road_mask_col, poi_mask_col, b_nodes, b_rmask_cols,
        _pad_lanes(region_x, hp),
        _pad_lanes(params["mask_road_token"], hp),
        _pad_lanes(params["mask_poi_token"], hp),
        _pad_lanes(params["mask_region_token"], hp),
        b_nmask_rows, tok_sel,
        inv_deg_e, inv_deg_e_mask, inv_deg_n_mask,
        _pad_square(hyp["we"], hp).astype(bf16), _pad_square(hyp["wn"], hp).astype(bf16),
        _pad_square(dec["w1"], hp).astype(bf16), _pad_lanes(dec["b1"], hp),
        _pad_square(dec["w2"], hp).astype(bf16), _pad_lanes(dec["b2"], hp),
    )

    grid = (nn_pad // tile_n,)
    in_specs = [
        pl.BlockSpec((tile_n, hp), lambda i: (i, 0)),            # x_nodes
        pl.BlockSpec((tile_n, 1), lambda i: (i, 0)),             # road mask col
        pl.BlockSpec((tile_n, 1), lambda i: (i, 0)),             # poi mask col
        pl.BlockSpec((tile_n, num_region), lambda i: (i, 0)),    # B rows
        pl.BlockSpec((tile_n, nmr_pad), lambda i: (i, 0)),       # B cols @ masked regions
        pl.BlockSpec((num_region, hp), lambda i: (0, 0)),        # region
        pl.BlockSpec((1, hp), lambda i: (0, 0)),                 # road token
        pl.BlockSpec((1, hp), lambda i: (0, 0)),                 # poi token
        pl.BlockSpec((1, hp), lambda i: (0, 0)),                 # region token
        pl.BlockSpec((nmn_pad, num_region), lambda i: (0, 0)),   # B rows @ masked nodes
        pl.BlockSpec((nmn_pad, 1), lambda i: (0, 0)),            # token selector
        pl.BlockSpec((num_region, 1), lambda i: (0, 0)),         # 1/deg_e
        pl.BlockSpec((nmr_pad, 1), lambda i: (0, 0)),            # 1/deg_e (masked regions)
        pl.BlockSpec((nmn_pad, 1), lambda i: (0, 0)),            # 1/deg_n (masked nodes)
        pl.BlockSpec((hp, hp), lambda i: (0, 0)),                # we
        pl.BlockSpec((hp, hp), lambda i: (0, 0)),                # wn
        pl.BlockSpec((hp, hp), lambda i: (0, 0)),                # w1
        pl.BlockSpec((1, hp), lambda i: (0, 0)),                 # b1
        pl.BlockSpec((hp, hp), lambda i: (0, 0)),                # w2
        pl.BlockSpec((1, hp), lambda i: (0, 0)),                 # b2
    ]
    out_specs = (
        pl.BlockSpec((nmn_pad, hp), lambda i: (0, 0)),
        pl.BlockSpec((nmr_pad, hp), lambda i: (0, 0)),
    )
    out_shape = (
        jax.ShapeDtypeStruct((nmn_pad, hp), f32),
        jax.ShapeDtypeStruct((nmr_pad, hp), f32),
    )

    node_res, region_res = pl.pallas_call(
        inter_encoder_kernel,
        out_shape=out_shape,
        grid_spec=pltpu.PrefetchScalarGridSpec(
            num_scalar_prefetch=0,
            grid=grid,
            in_specs=in_specs,
            out_specs=out_specs,
            scratch_shapes=[pltpu.VMEM((num_region, hp), f32),
                            pltpu.VMEM((nmr_pad, hp), f32)]),
        compiler_params=pltpu.CompilerParams(
            dimension_semantics=("arbitrary",),          # node axis is a reduction
            vmem_limit_bytes=48 * 1024 * 1024),          # fits v7x's 64 MiB physical
    )(*args)

    # decoded masked rows (slice off sublane/lane padding)
    road_res = node_res[:n_mask_road, :hid_dim]
    poi_res = node_res[n_mask_road:n_mask_road + n_mask_poi, :hid_dim]
    region_res = region_res[:n_mask_region, :hid_dim]

    # targets are plain index gathers on the raw inputs (no matmul, no kernel work)
    road_tgt = jnp.take(road_x, mask_road_idx, axis=0)
    region_tgt = jnp.take(region_x, mask_region_idx, axis=0)
    poi_tgt = jnp.take(poi_x, mask_poi_idx, axis=0)

    return road_res, road_tgt, region_res, region_tgt, poi_res, poi_tgt


# ----------------------------------- main --------------------------------------

if __name__ == "__main__":
    hid_dim = 32            # lane-padded to 128 inside the wrapper
    num_poi, num_road, num_region = 64, 64, 16
    num_nodes = num_road + num_poi

    root = jax.random.PRNGKey(0)
    keys = jax.random.split(root, 12)

    params = {
        "mask_poi_token": jax.random.uniform(keys[0], (1, hid_dim), jnp.float32),
        "mask_road_token": jax.random.uniform(keys[1], (1, hid_dim), jnp.float32),
        "mask_region_token": jax.random.uniform(keys[2], (1, hid_dim), jnp.float32),
        "decoder": {
            "w1": 0.1 * jax.random.normal(keys[3], (hid_dim, hid_dim), jnp.float32),
            "b1": jnp.zeros((1, hid_dim), jnp.float32),
            "w2": 0.1 * jax.random.normal(keys[4], (hid_dim, hid_dim), jnp.float32),
            "b2": jnp.zeros((1, hid_dim), jnp.float32),
        },
        "hyper": {
            "we": 0.1 * jax.random.normal(keys[5], (hid_dim, hid_dim), jnp.float32),
            "wn": 0.1 * jax.random.normal(keys[6], (hid_dim, hid_dim), jnp.float32),
        },
    }

    poi_embedding = jax.random.normal(keys[7], (num_poi, hid_dim), jnp.float32)
    road_embedding = jax.random.normal(keys[8], (num_road, hid_dim), jnp.float32)
    region_embedding = jax.random.normal(keys[9], (num_region, hid_dim), jnp.float32)

    # synthetic hyperedge_index [2, nnz]: each hyper-node belongs to one region edge
    node_idx = jnp.arange(num_nodes, dtype=jnp.int32)
    edge_idx = jax.random.randint(keys[10], (num_nodes,), 0, num_region, jnp.int32)
    hyperedge_index = jnp.stack([node_idx, edge_idx], axis=0)

    data = {
        "poi_embedding": poi_embedding,
        "road_embedding": road_embedding,
        "region_embedding": region_embedding,
        "hyperedge_index": hyperedge_index,
    }

    outs = inter_encoder_forward(params, data, keys[11])
    outs = jax.block_until_ready(outs)

    n_mr = int(0.3 * num_road)      # 19
    n_mg = int(0.3 * num_region)    # 4
    n_mp = int(0.3 * num_poi)       # 19
    assert outs[0].shape == (n_mr, hid_dim) and outs[1].shape == (n_mr, hid_dim)
    assert outs[2].shape == (n_mg, hid_dim) and outs[3].shape == (n_mg, hid_dim)
    assert outs[4].shape == (n_mp, hid_dim) and outs[5].shape == (n_mp, hid_dim)
    assert all(bool(jnp.all(jnp.isfinite(o))) for o in outs)
    print("KERNEL_OK")
</pallas_src>

<mosaic_0001>
module attributes {stable_mosaic.version = 11 : i64} {
  func.func @inter_encoder_kernel(%arg0: i32, %arg1: memref<32x128xf32, #tpu.memory_space<vmem>>, %arg2: memref<32x1xf32, #tpu.memory_space<vmem>>, %arg3: memref<32x1xf32, #tpu.memory_space<vmem>>, %arg4: memref<32x16xbf16, #tpu.memory_space<vmem>>, %arg5: memref<32x8xbf16, #tpu.memory_space<vmem>>, %arg6: memref<16x128xf32, #tpu.memory_space<vmem>>, %arg7: memref<1x128xf32, #tpu.memory_space<vmem>>, %arg8: memref<1x128xf32, #tpu.memory_space<vmem>>, %arg9: memref<1x128xf32, #tpu.memory_space<vmem>>, %arg10: memref<40x16xbf16, #tpu.memory_space<vmem>>, %arg11: memref<40x1xf32, #tpu.memory_space<vmem>>, %arg12: memref<16x1xf32, #tpu.memory_space<vmem>>, %arg13: memref<8x1xf32, #tpu.memory_space<vmem>>, %arg14: memref<40x1xf32, #tpu.memory_space<vmem>>, %arg15: memref<128x128xbf16, #tpu.memory_space<vmem>>, %arg16: memref<128x128xbf16, #tpu.memory_space<vmem>>, %arg17: memref<128x128xbf16, #tpu.memory_space<vmem>>, %arg18: memref<1x128xf32, #tpu.memory_space<vmem>>, %arg19: memref<128x128xbf16, #tpu.memory_space<vmem>>, %arg20: memref<1x128xf32, #tpu.memory_space<vmem>>, %arg21: memref<40x128xf32, #tpu.memory_space<vmem>>, %arg22: memref<8x128xf32, #tpu.memory_space<vmem>>, %arg23: memref<16x128xf32, #tpu.memory_space<vmem>>, %arg24: memref<8x128xf32, #tpu.memory_space<vmem>>) attributes {dimension_semantics = [#tpu.dimension_semantics<arbitrary>], iteration_bounds = array<i64: 4>, scalar_prefetch = 0 : i64, scratch_operands = 2 : i64, tpu.core_type = #tpu.core_type<tc>, window_params = [{transform_indices = @transform_0, window_bounds = array<i64: 32, 128>}, {transform_indices = @transform_1, window_bounds = array<i64: 32, 1>}, {transform_indices = @transform_2, window_bounds = array<i64: 32, 1>}, {transform_indices = @transform_3, window_bounds = array<i64: 32, 16>}, {transform_indices = @transform_4, window_bounds = array<i64: 32, 8>}, {pipeline_mode = #tpu.pipeline_mode<synchronous>, transform_indices = @transform_5, window_bounds = array<i64: 16, 128>}, {pipeline_mode = #tpu.pipeline_mode<synchronous>, transform_indices = @transform_6, window_bounds = array<i64: 1, 128>}, {pipeline_mode = #tpu.pipeline_mode<synchronous>, transform_indices = @transform_7, window_bounds = array<i64: 1, 128>}, {pipeline_mode = #tpu.pipeline_mode<synchronous>, transform_indices = @transform_8, window_bounds = array<i64: 1, 128>}, {pipeline_mode = #tpu.pipeline_mode<synchronous>, transform_indices = @transform_9, window_bounds = array<i64: 40, 16>}, {pipeline_mode = #tpu.pipeline_mode<synchronous>, transform_indices = @transform_10, window_bounds = array<i64: 40, 1>}, {pipeline_mode = #tpu.pipeline_mode<synchronous>, transform_indices = @transform_11, window_bounds = array<i64: 16, 1>}, {pipeline_mode = #tpu.pipeline_mode<synchronous>, transform_indices = @transform_12, window_bounds = array<i64: 8, 1>}, {pipeline_mode = #tpu.pipeline_mode<synchronous>, transform_indices = @transform_13, window_bounds = array<i64: 40, 1>}, {pipeline_mode = #tpu.pipeline_mode<synchronous>, transform_indices = @transform_14, window_bounds = array<i64: 128, 128>}, {pipeline_mode = #tpu.pipeline_mode<synchronous>, transform_indices = @transform_15, window_bounds = array<i64: 128, 128>}, {pipeline_mode = #tpu.pipeline_mode<synchronous>, transform_indices = @transform_16, window_bounds = array<i64: 128, 128>}, {pipeline_mode = #tpu.pipeline_mode<synchronous>, transform_indices = @transform_17, window_bounds = array<i64: 1, 128>}, {pipeline_mode = #tpu.pipeline_mode<synchronous>, transform_indices = @transform_18, window_bounds = array<i64: 128, 128>}, {pipeline_mode = #tpu.pipeline_mode<synchronous>, transform_indices = @transform_19, window_bounds = array<i64: 1, 128>}, {pipeline_mode = #tpu.pipeline_mode<synchronous>, transform_indices = @transform_20, window_bounds = array<i64: 40, 128>}, {pipeline_mode = #tpu.pipeline_mode<synchronous>, transform_indices = @transform_21, window_bounds = array<i64: 8, 128>}]} {
    %c0_i32 = arith.constant 0 : i32
    %0 = arith.cmpi eq, %arg0, %c0_i32 : i32
    %1 = arith.extui %0 : i1 to i32
    %c0_i32_0 = arith.constant 0 : i32
    %2 = arith.cmpi ne, %1, %c0_i32_0 : i32
    scf.if %2 {
      %cst_26 = arith.constant 0.000000e+00 : f32
      %37 = vector.broadcast %cst_26 : f32 to vector<16x128xf32>
      %c0_27 = arith.constant 0 : index
      %c0_28 = arith.constant 0 : index
      %38 = vector.load %arg23[%c0_27, %c0_28] : memref<16x128xf32, #tpu.memory_space<vmem>>, vector<16x128xf32>
      tpu.vector_store %arg23[%c0_27, %c0_28], %37 {strides = array<i32>} : memref<16x128xf32, #tpu.memory_space<vmem>>, vector<16x128xf32>,
      %cst_29 = arith.constant 0.000000e+00 : f32
      %39 = vector.broadcast %cst_29 : f32 to vector<8x128xf32>
      %c0_30 = arith.constant 0 : index
      %c0_31 = arith.constant 0 : index
      %40 = vector.load %arg24[%c0_30, %c0_31] : memref<8x128xf32, #tpu.memory_space<vmem>>, vector<8x128xf32>
      tpu.vector_store %arg24[%c0_30, %c0_31], %39 {strides = array<i32>} : memref<8x128xf32, #tpu.memory_space<vmem>>, vector<8x128xf32>,
    } else {
    }
    %c0 = arith.constant 0 : index
    %c0_1 = arith.constant 0 : index
    %3 = vector.load %arg1[%c0, %c0_1] : memref<32x128xf32, #tpu.memory_space<vmem>>, vector<32x128xf32>
    %c0_2 = arith.constant 0 : index
    %c0_3 = arith.constant 0 : index
    %4 = vector.load %arg2[%c0_2, %c0_3] : memref<32x1xf32, #tpu.memory_space<vmem>>, vector<32x1xf32>
    %cst = arith.constant 0.000000e+00 : f32
    %5 = vector.broadcast %cst : f32 to vector<32x1xf32>
    %6 = arith.cmpf ogt, %4, %5 : vector<32x1xf32>
    %c0_4 = arith.constant 0 : index
    %c0_5 = arith.constant 0 : index
    %7 = vector.load %arg7[%c0_4, %c0_5] : memref<1x128xf32, #tpu.memory_space<vmem>>, vector<1x128xf32>
    %c0_6 = arith.constant 0 : index
    %c0_7 = arith.constant 0 : index
    %8 = vector.load %arg3[%c0_6, %c0_7] : memref<32x1xf32, #tpu.memory_space<vmem>>, vector<32x1xf32>
    %cst_8 = arith.constant 0.000000e+00 : f32
    %9 = vector.broadcast %cst_8 : f32 to vector<32x1xf32>
    %10 = arith.cmpf ogt, %8, %9 : vector<32x1xf32>
    %c0_9 = arith.constant 0 : index
    %c0_10 = arith.constant 0 : index
    %11 = vector.load %arg8[%c0_9, %c0_10] : memref<1x128xf32, #tpu.memory_space<vmem>>, vector<1x128xf32>
    %12 = vector.shape_cast %10 : vector<32x1xi1> to vector<32x1xi1>
    %13 = vector.broadcast %12 : vector<32x1xi1> to vector<32x128xi1>
    %14 = vector.shape_cast %11 : vector<1x128xf32> to vector<1x128xf32>
    %15 = vector.broadcast %14 : vector<1x128xf32> to vector<32x128xf32>
    %16 = arith.select %13, %15, %3 : vector<32x128xi1>, vector<32x128xf32>
    %17 = vector.shape_cast %6 : vector<32x1xi1> to vector<32x1xi1>
    %18 = vector.broadcast %17 : vector<32x1xi1> to vector<32x128xi1>
    %19 = vector.shape_cast %7 : vector<1x128xf32> to vector<1x128xf32>
    %20 = vector.broadcast %19 : vector<1x128xf32> to vector<32x128xf32>
    %21 = arith.select %18, %20, %16 : vector<32x128xi1>, vector<32x128xf32>
    %c0_11 = arith.constant 0 : index
    %c0_12 = arith.constant 0 : index
    %22 = vector.load %arg23[%c0_11, %c0_12] : memref<16x128xf32, #tpu.memory_space<vmem>>, vector<16x128xf32>
    %c0_13 = arith.constant 0 : index
    %c0_14 = arith.constant 0 : index
    %23 = vector.load %arg4[%c0_13, %c0_14] : memref<32x16xbf16, #tpu.memory_space<vmem>>, vector<32x16xbf16>
    %24 = arith.truncf %21 : vector<32x128xf32> to vector<32x128xbf16>
    %cst_15 = arith.constant dense<0.000000e+00> : vector<16x128xf32>
    %25 = tpu.matmul %23, %24, %cst_15 {dimension_numbers = #tpu.dot_dimension_numbers<[0], [0], [1], [1], [0, 1, 1, 1], [], []>} : vector<32x16xbf16>, vector<32x128xbf16>, vector<16x128xf32> -> vector<16x128xf32>
    %26 = arith.addf %22, %25 : vector<16x128xf32>
    %c0_16 = arith.constant 0 : index
    %c0_17 = arith.constant 0 : index
    %27 = vector.load %arg23[%c0_16, %c0_17] : memref<16x128xf32, #tpu.memory_space<vmem>>, vector<16x128xf32>
    tpu.vector_store %arg23[%c0_16, %c0_17], %26 {strides = array<i32>} : memref<16x128xf32, #tpu.memory_space<vmem>>, vector<16x128xf32>,
    %c0_18 = arith.constant 0 : index
    %c0_19 = arith.constant 0 : index
    %28 = vector.load %arg24[%c0_18, %c0_19] : memref<8x128xf32, #tpu.memory_space<vmem>>, vector<8x128xf32>
    %c0_20 = arith.constant 0 : index
    %c0_21 = arith.constant 0 : index
    %29 = vector.load %arg5[%c0_20, %c0_21] : memref<32x8xbf16, #tpu.memory_space<vmem>>, vector<32x8xbf16>
    %30 = arith.truncf %3 : vector<32x128xf32> to vector<32x128xbf16>
    %cst_22 = arith.constant dense<0.000000e+00> : vector<8x128xf32>
    %31 = tpu.matmul %29, %30, %cst_22 {dimension_numbers = #tpu.dot_dimension_numbers<[0], [0], [1], [1], [0, 1, 1, 1], [], []>} : vector<32x8xbf16>, vector<32x128xbf16>, vector<8x128xf32> -> vector<8x128xf32>
    %32 = arith.addf %28, %31 : vector<8x128xf32>
    %c0_23 = arith.constant 0 : index
    %c0_24 = arith.constant 0 : index
    %33 = vector.load %arg24[%c0_23, %c0_24] : memref<8x128xf32, #tpu.memory_space<vmem>>, vector<8x128xf32>
    tpu.vector_store %arg24[%c0_23, %c0_24], %32 {strides = array<i32>} : memref<8x128xf32, #tpu.memory_space<vmem>>, vector<8x128xf32>,
    %c3_i32 = arith.constant 3 : i32
    %34 = arith.cmpi eq, %arg0, %c3_i32 : i32
    %35 = arith.extui %34 : i1 to i32
    %c0_i32_25 = arith.constant 0 : i32
    %36 = arith.cmpi ne, %35, %c0_i32_25 : i32
    scf.if %36 {
      %c0_26 = arith.constant 0 : index
      %c0_27 = arith.constant 0 : index
      %37 = vector.load %arg15[%c0_26, %c0_27] : memref<128x128xbf16, #tpu.memory_space<vmem>>, vector<128x128xbf16>
      %c0_28 = arith.constant 0 : index
      %c0_29 = arith.constant 0 : index
      %38 = vector.load %arg16[%c0_28, %c0_29] : memref<128x128xbf16, #tpu.memory_space<vmem>>, vector<128x128xbf16>
      %c0_30 = arith.constant 0 : index
      %c0_31 = arith.constant 0 : index
      %39 = vector.load %arg17[%c0_30, %c0_31] : memref<128x128xbf16, #tpu.memory_space<vmem>>, vector<128x128xbf16>
      %c0_32 = arith.constant 0 : index
      %c0_33 = arith.constant 0 : index
      %40 = vector.load %arg18[%c0_32, %c0_33] : memref<1x128xf32, #tpu.memory_space<vmem>>, vector<1x128xf32>
      %c0_34 = arith.constant 0 : index
      %c0_35 = arith.constant 0 : index
      %41 = vector.load %arg19[%c0_34, %c0_35] : memref<128x128xbf16, #tpu.memory_space<vmem>>, vector<128x128xbf16>
      %c0_36 = arith.constant 0 : index
      %c0_37 = arith.constant 0 : index
      %42 = vector.load %arg20[%c0_36, %c0_37] : memref<1x128xf32, #tpu.memory_space<vmem>>, vector<1x128xf32>
      %c0_38 = arith.constant 0 : index
      %c0_39 = arith.constant 0 : index
      %43 = vector.load %arg23[%c0_38, %c0_39] : memref<16x128xf32, #tpu.memory_space<vmem>>, vector<16x128xf32>
      %c0_40 = arith.constant 0 : index
      %c0_41 = arith.constant 0 : index
      %44 = vector.load %arg12[%c0_40, %c0_41] : memref<16x1xf32, #tpu.memory_space<vmem>>, vector<16x1xf32>
      %45 = vector.broadcast %44 : vector<16x1xf32> to vector<16x128xf32>
      %46 = arith.mulf %43, %45 : vector<16x128xf32>
      %c0_42 = arith.constant 0 : index
      %c0_43 = arith.constant 0 : index
      %47 = vector.load %arg6[%c0_42, %c0_43] : memref<16x128xf32, #tpu.memory_space<vmem>>, vector<16x128xf32>
      %48 = arith.addf %46, %47 : vector<16x128xf32>
      %49 = arith.truncf %48 : vector<16x128xf32> to vector<16x128xbf16>
      %cst_44 = arith.constant dense<0.000000e+00> : vector<16x128xf32>
      %50 = tpu.matmul %49, %37, %cst_44 {dimension_numbers = #tpu.dot_dimension_numbers<[1], [0], [0], [1], [0, 0, 1, 1], [], []>} : vector<16x128xbf16>, vector<128x128xbf16>, vector<16x128xf32> -> vector<16x128xf32>
      %cst_45 = arith.constant 0.000000e+00 : f32
      %51 = vector.broadcast %cst_45 : f32 to vector<16x128xf32>
      %52 = arith.cmpf ogt, %50, %51 : vector<16x128xf32>
      %cst_46 = arith.constant 0.000000e+00 : f32
      %53 = vector.broadcast %cst_46 : f32 to vector<16x128xf32>
      %54 = arith.minimumf %50, %53 : vector<16x128xf32>
      %55 = math.exp %54 : vector<16x128xf32>
      %cst_47 = arith.constant 1.000000e+00 : f32
      %56 = vector.broadcast %cst_47 : f32 to vector<16x128xf32>
      %57 = arith.subf %55, %56 : vector<16x128xf32>
      %58 = arith.select %52, %50, %57 : vector<16x128xi1>, vector<16x128xf32>
      %c0_48 = arith.constant 0 : index
      %c0_49 = arith.constant 0 : index
      %59 = vector.load %arg10[%c0_48, %c0_49] : memref<40x16xbf16, #tpu.memory_space<vmem>>, vector<40x16xbf16>
      %60 = arith.truncf %58 : vector<16x128xf32> to vector<16x128xbf16>
      %cst_50 = arith.constant dense<0.000000e+00> : vector<40x128xf32>
      %61 = tpu.matmul %59, %60, %cst_50 {dimension_numbers = #tpu.dot_dimension_numbers<[1], [0], [0], [1], [0, 0, 1, 1], [], []>} : vector<40x16xbf16>, vector<16x128xbf16>, vector<40x128xf32> -> vector<40x128xf32>
      %c0_51 = arith.constant 0 : index
      %c0_52 = arith.constant 0 : index
      %62 = vector.load %arg14[%c0_51, %c0_52] : memref<40x1xf32, #tpu.memory_space<vmem>>, vector<40x1xf32>
      %63 = vector.broadcast %62 : vector<40x1xf32> to vector<40x128xf32>
      %64 = arith.mulf %61, %63 : vector<40x128xf32>
      %c0_53 = arith.constant 0 : index
      %c0_54 = arith.constant 0 : index
      %65 = vector.load %arg11[%c0_53, %c0_54] : memref<40x1xf32, #tpu.memory_space<vmem>>, vector<40x1xf32>
      %cst_55 = arith.constant 0.000000e+00 : f32
      %66 = vector.broadcast %cst_55 : f32 to vector<40x1xf32>
      %67 = arith.cmpf ogt, %65, %66 : vector<40x1xf32>
      %c0_56 = arith.constant 0 : index
      %c0_57 = arith.constant 0 : index
      %68 = vector.load %arg7[%c0_56, %c0_57] : memref<1x128xf32, #tpu.memory_space<vmem>>, vector<1x128xf32>
      %c0_58 = arith.constant 0 : index
      %c0_59 = arith.constant 0 : index
      %69 = vector.load %arg8[%c0_58, %c0_59] : memref<1x128xf32, #tpu.memory_space<vmem>>, vector<1x128xf32>
      %70 = vector.shape_cast %67 : vector<40x1xi1> to vector<40x1xi1>
      %71 = vector.broadcast %70 : vector<40x1xi1> to vector<40x128xi1>
      %72 = vector.shape_cast %68 : vector<1x128xf32> to vector<1x128xf32>
      %73 = vector.broadcast %72 : vector<1x128xf32> to vector<40x128xf32>
      %74 = vector.shape_cast %69 : vector<1x128xf32> to vector<1x128xf32>
      %75 = vector.broadcast %74 : vector<1x128xf32> to vector<40x128xf32>
      %76 = arith.select %71, %73, %75 : vector<40x128xi1>, vector<40x128xf32>
      %77 = arith.addf %64, %76 : vector<40x128xf32>
      %78 = arith.truncf %77 : vector<40x128xf32> to vector<40x128xbf16>
      %cst_60 = arith.constant dense<0.000000e+00> : vector<40x128xf32>
      %79 = tpu.matmul %78, %38, %cst_60 {dimension_numbers = #tpu.dot_dimension_numbers<[1], [0], [0], [1], [0, 0, 1, 1], [], []>} : vector<40x128xbf16>, vector<128x128xbf16>, vector<40x128xf32> -> vector<40x128xf32>
      %cst_61 = arith.constant 0.000000e+00 : f32
      %80 = vector.broadcast %cst_61 : f32 to vector<40x128xf32>
      %81 = arith.cmpf ogt, %79, %80 : vector<40x128xf32>
      %cst_62 = arith.constant 0.000000e+00 : f32
      %82 = vector.broadcast %cst_62 : f32 to vector<40x128xf32>
      %83 = arith.minimumf %79, %82 : vector<40x128xf32>
      %84 = math.exp %83 : vector<40x128xf32>
      %cst_63 = arith.constant 1.000000e+00 : f32
      %85 = vector.broadcast %cst_63 : f32 to vector<40x128xf32>
      %86 = arith.subf %84, %85 : vector<40x128xf32>
      %87 = arith.select %81, %79, %86 : vector<40x128xi1>, vector<40x128xf32>
      %88 = arith.mulf %87, %87 : vector<40x128xf32>
      %cst_64 = arith.constant dense<0.000000e+00> : vector<40xf32>
      %89 = vector.multi_reduction <add>, %88, %cst_64 [1] : vector<40x128xf32> to vector<40xf32>
      %90 = vector.shape_cast %89 : vector<40xf32> to vector<40x1xf32>
      %cst_65 = arith.constant 1.000000e-24 : f32
      %91 = vector.broadcast %cst_65 : f32 to vector<40x1xf32>
      %92 = arith.maximumf %90, %91 : vector<40x1xf32>
      %93 = math.rsqrt %92 : vector<40x1xf32>
      %94 = vector.broadcast %93 : vector<40x1xf32> to vector<40x128xf32>
      %95 = arith.mulf %87, %94 : vector<40x128xf32>
      %c0_66 = arith.constant 0 : index
      %c0_67 = arith.constant 0 : index
      %96 = vector.load %arg24[%c0_66, %c0_67] : memref<8x128xf32, #tpu.memory_space<vmem>>, vector<8x128xf32>
      %c0_68 = arith.constant 0 : index
      %c0_69 = arith.constant 0 : index
      %97 = vector.load %arg13[%c0_68, %c0_69] : memref<8x1xf32, #tpu.memory_space<vmem>>, vector<8x1xf32>
      %98 = vector.broadcast %97 : vector<8x1xf32> to vector<8x128xf32>
      %99 = arith.mulf %96, %98 : vector<8x128xf32>
      %c0_70 = arith.constant 0 : index
      %c0_71 = arith.constant 0 : index
      %100 = vector.load %arg9[%c0_70, %c0_71] : memref<1x128xf32, #tpu.memory_space<vmem>>, vector<1x128xf32>
      %101 = vector.broadcast %100 : vector<1x128xf32> to vector<8x128xf32>
      %102 = arith.addf %99, %101 : vector<8x128xf32>
      %103 = arith.truncf %102 : vector<8x128xf32> to vector<8x128xbf16>
      %cst_72 = arith.constant dense<0.000000e+00> : vector<8x128xf32>
      %104 = tpu.matmul %103, %37, %cst_72 {dimension_numbers = #tpu.dot_dimension_numbers<[1], [0], [0], [1], [0, 0, 1, 1], [], []>} : vector<8x128xbf16>, vector<128x128xbf16>, vector<8x128xf32> -> vector<8x128xf32>
      %cst_73 = arith.constant 0.000000e+00 : f32
      %105 = vector.broadcast %cst_73 : f32 to vector<8x128xf32>
      %106 = arith.cmpf ogt, %104, %105 : vector<8x128xf32>
      %cst_74 = arith.constant 0.000000e+00 : f32
      %107 = vector.broadcast %cst_74 : f32 to vector<8x128xf32>
      %108 = arith.minimumf %104, %107 : vector<8x128xf32>
      %109 = math.exp %108 : vector<8x128xf32>
      %cst_75 = arith.constant 1.000000e+00 : f32
      %110 = vector.broadcast %cst_75 : f32 to vector<8x128xf32>
      %111 = arith.subf %109, %110 : vector<8x128xf32>
      %112 = arith.select %106, %104, %111 : vector<8x128xi1>, vector<8x128xf32>
      %113 = arith.mulf %112, %112 : vector<8x128xf32>
      %cst_76 = arith.constant dense<0.000000e+00> : vector<8xf32>
      %114 = vector.multi_reduction <add>, %113, %cst_76 [1] : vector<8x128xf32> to vector<8xf32>
      %115 = vector.shape_cast %114 : vector<8xf32> to vector<8x1xf32>
      %cst_77 = arith.constant 1.000000e-24 : f32
      %116 = vector.broadcast %cst_77 : f32 to vector<8x1xf32>
      %117 = arith.maximumf %115, %116 : vector<8x1xf32>
      %118 = math.rsqrt %117 : vector<8x1xf32>
      %119 = vector.broadcast %118 : vector<8x1xf32> to vector<8x128xf32>
      %120 = arith.mulf %112, %119 : vector<8x128xf32>
      %121 = arith.truncf %95 : vector<40x128xf32> to vector<40x128xbf16>
      %cst_78 = arith.constant dense<0.000000e+00> : vector<40x128xf32>
      %122 = tpu.matmul %121, %39, %cst_78 {dimension_numbers = #tpu.dot_dimension_numbers<[1], [0], [0], [1], [0, 0, 1, 1], [], []>} : vector<40x128xbf16>, vector<128x128xbf16>, vector<40x128xf32> -> vector<40x128xf32>
      %123 = vector.broadcast %40 : vector<1x128xf32> to vector<40x128xf32>
      %124 = arith.addf %122, %123 : vector<40x128xf32>
      %cst_79 = arith.constant 0.000000e+00 : f32
      %125 = vector.broadcast %cst_79 : f32 to vector<40x128xf32>
      %126 = arith.cmpf ogt, %124, %125 : vector<40x128xf32>
      %cst_80 = arith.constant 0.000000e+00 : f32
      %127 = vector.broadcast %cst_80 : f32 to vector<40x128xf32>
      %128 = arith.minimumf %124, %127 : vector<40x128xf32>
      %129 = math.exp %128 : vector<40x128xf32>
      %cst_81 = arith.constant 1.000000e+00 : f32
      %130 = vector.broadcast %cst_81 : f32 to vector<40x128xf32>
      %131 = arith.subf %129, %130 : vector<40x128xf32>
      %132 = arith.select %126, %124, %131 : vector<40x128xi1>, vector<40x128xf32>
      %133 = arith.truncf %132 : vector<40x128xf32> to vector<40x128xbf16>
      %cst_82 = arith.constant dense<0.000000e+00> : vector<40x128xf32>
      %134 = tpu.matmul %133, %41, %cst_82 {dimension_numbers = #tpu.dot_dimension_numbers<[1], [0], [0], [1], [0, 0, 1, 1], [], []>} : vector<40x128xbf16>, vector<128x128xbf16>, vector<40x128xf32> -> vector<40x128xf32>
      %135 = vector.broadcast %42 : vector<1x128xf32> to vector<40x128xf32>
      %136 = arith.addf %134, %135 : vector<40x128xf32>
      %c0_83 = arith.constant 0 : index
      %c0_84 = arith.constant 0 : index
      %137 = vector.load %arg21[%c0_83, %c0_84] : memref<40x128xf32, #tpu.memory_space<vmem>>, vector<40x128xf32>
      tpu.vector_store %arg21[%c0_83, %c0_84], %136 {strides = array<i32>} : memref<40x128xf32, #tpu.memory_space<vmem>>, vector<40x128xf32>,
      %138 = arith.truncf %120 : vector<8x128xf32> to vector<8x128xbf16>
      %cst_85 = arith.constant dense<0.000000e+00> : vector<8x128xf32>
      %139 = tpu.matmul %138, %39, %cst_85 {dimension_numbers = #tpu.dot_dimension_numbers<[1], [0], [0], [1], [0, 0, 1, 1], [], []>} : vector<8x128xbf16>, vector<128x128xbf16>, vector<8x128xf32> -> vector<8x128xf32>
      %140 = vector.broadcast %40 : vector<1x128xf32> to vector<8x128xf32>
      %141 = arith.addf %139, %140 : vector<8x128xf32>
      %cst_86 = arith.constant 0.000000e+00 : f32
      %142 = vector.broadcast %cst_86 : f32 to vector<8x128xf32>
      %143 = arith.cmpf ogt, %141, %142 : vector<8x128xf32>
      %cst_87 = arith.constant 0.000000e+00 : f32
      %144 = vector.broadcast %cst_87 : f32 to vector<8x128xf32>
      %145 = arith.minimumf %141, %144 : vector<8x128xf32>
      %146 = math.exp %145 : vector<8x128xf32>
      %cst_88 = arith.constant 1.000000e+00 : f32
      %147 = vector.broadcast %cst_88 : f32 to vector<8x128xf32>
      %148 = arith.subf %146, %147 : vector<8x128xf32>
      %149 = arith.select %143, %141, %148 : vector<8x128xi1>, vector<8x128xf32>
      %150 = arith.truncf %149 : vector<8x128xf32> to vector<8x128xbf16>
      %cst_89 = arith.constant dense<0.000000e+00> : vector<8x128xf32>
      %151 = tpu.matmul %150, %41, %cst_89 {dimension_numbers = #tpu.dot_dimension_numbers<[1], [0], [0], [1], [0, 0, 1, 1], [], []>} : vector<8x128xbf16>, vector<128x128xbf16>, vector<8x128xf32> -> vector<8x128xf32>
      %152 = vector.broadcast %42 : vector<1x128xf32> to vector<8x128xf32>
      %153 = arith.addf %151, %152 : vector<8x128xf32>
      %c0_90 = arith.constant 0 : index
      %c0_91 = arith.constant 0 : index
      %154 = vector.load %arg22[%c0_90, %c0_91] : memref<8x128xf32, #tpu.memory_space<vmem>>, vector<8x128xf32>
      tpu.vector_store %arg22[%c0_90, %c0_91], %153 {strides = array<i32>} : memref<8x128xf32, #tpu.memory_space<vmem>>, vector<8x128xf32>,
    } else {
    }
    return
  }
  func.func @transform_0(%arg0: i32) -> (i32, i32) {
    %c0_i32 = arith.constant 0 : i32
    %c0_i32_0 = arith.constant 0 : i32
    return %arg0, %c0_i32 : i32, i32
  }
  func.func @transform_1(%arg0: i32) -> (i32, i32) {
    %c0_i32 = arith.constant 0 : i32
    %c0_i32_0 = arith.constant 0 : i32
    return %arg0, %c0_i32 : i32, i32
  }
  func.func @transform_2(%arg0: i32) -> (i32, i32) {
    %c0_i32 = arith.constant 0 : i32
    %c0_i32_0 = arith.constant 0 : i32
    return %arg0, %c0_i32 : i32, i32
  }
  func.func @transform_3(%arg0: i32) -> (i32, i32) {
    %c0_i32 = arith.constant 0 : i32
    %c0_i32_0 = arith.constant 0 : i32
    return %arg0, %c0_i32 : i32, i32
  }
  func.func @transform_4(%arg0: i32) -> (i32, i32) {
    %c0_i32 = arith.constant 0 : i32
    %c0_i32_0 = arith.constant 0 : i32
    return %arg0, %c0_i32 : i32, i32
  }
  func.func @transform_5(%arg0: i32) -> (i32, i32) {
    %c0_i32 = arith.constant 0 : i32
    %c0_i32_0 = arith.constant 0 : i32
    %c0_i32_1 = arith.constant 0 : i32
    return %c0_i32, %c0_i32_0 : i32, i32
  }
  func.func @transform_6(%arg0: i32) -> (i32, i32) {
    %c0_i32 = arith.constant 0 : i32
    %c0_i32_0 = arith.constant 0 : i32
    %c0_i32_1 = arith.constant 0 : i32
    return %c0_i32, %c0_i32_0 : i32, i32
  }
  func.func @transform_7(%arg0: i32) -> (i32, i32) {
    %c0_i32 = arith.constant 0 : i32
    %c0_i32_0 = arith.constant 0 : i32
    %c0_i32_1 = arith.constant 0 : i32
    return %c0_i32, %c0_i32_0 : i32, i32
  }
  func.func @transform_8(%arg0: i32) -> (i32, i32) {
    %c0_i32 = arith.constant 0 : i32
    %c0_i32_0 = arith.constant 0 : i32
    %c0_i32_1 = arith.constant 0 : i32
    return %c0_i32, %c0_i32_0 : i32, i32
  }
  func.func @transform_9(%arg0: i32) -> (i32, i32) {
    %c0_i32 = arith.constant 0 : i32
    %c0_i32_0 = arith.constant 0 : i32
    %c0_i32_1 = arith.constant 0 : i32
    return %c0_i32, %c0_i32_0 : i32, i32
  }
  func.func @transform_10(%arg0: i32) -> (i32, i32) {
    %c0_i32 = arith.constant 0 : i32
    %c0_i32_0 = arith.constant 0 : i32
    %c0_i32_1 = arith.constant 0 : i32
    return %c0_i32, %c0_i32_0 : i32, i32
  }
  func.func @transform_11(%arg0: i32) -> (i32, i32) {
    %c0_i32 = arith.constant 0 : i32
    %c0_i32_0 = arith.constant 0 : i32
    %c0_i32_1 = arith.constant 0 : i32
    return %c0_i32, %c0_i32_0 : i32, i32
  }
  func.func @transform_12(%arg0: i32) -> (i32, i32) {
    %c0_i32 = arith.constant 0 : i32
    %c0_i32_0 = arith.constant 0 : i32
    %c0_i32_1 = arith.constant 0 : i32
    return %c0_i32, %c0_i32_0 : i32, i32
  }
  func.func @transform_13(%arg0: i32) -> (i32, i32) {
    %c0_i32 = arith.constant 0 : i32
    %c0_i32_0 = arith.constant 0 : i32
    %c0_i32_1 = arith.constant 0 : i32
    return %c0_i32, %c0_i32_0 : i32, i32
  }
  func.func @transform_14(%arg0: i32) -> (i32, i32) {
    %c0_i32 = arith.constant 0 : i32
    %c0_i32_0 = arith.constant 0 : i32
    %c0_i32_1 = arith.constant 0 : i32
    return %c0_i32, %c0_i32_0 : i32, i32
  }
  func.func @transform_15(%arg0: i32) -> (i32, i32) {
    %c0_i32 = arith.constant 0 : i32
    %c0_i32_0 = arith.constant 0 : i32
    %c0_i32_1 = arith.constant 0 : i32
    return %c0_i32, %c0_i32_0 : i32, i32
  }
  func.func @transform_16(%arg0: i32) -> (i32, i32) {
    %c0_i32 = arith.constant 0 : i32
    %c0_i32_0 = arith.constant 0 : i32
    %c0_i32_1 = arith.constant 0 : i32
    return %c0_i32, %c0_i32_0 : i32, i32
  }
  func.func @transform_17(%arg0: i32) -> (i32, i32) {
    %c0_i32 = arith.constant 0 : i32
    %c0_i32_0 = arith.constant 0 : i32
    %c0_i32_1 = arith.constant 0 : i32
    return %c0_i32, %c0_i32_0 : i32, i32
  }
  func.func @transform_18(%arg0: i32) -> (i32, i32) {
    %c0_i32 = arith.constant 0 : i32
    %c0_i32_0 = arith.constant 0 : i32
    %c0_i32_1 = arith.constant 0 : i32
    return %c0_i32, %c0_i32_0 : i32, i32
  }
  func.func @transform_19(%arg0: i32) -> (i32, i32) {
    %c0_i32 = arith.constant 0 : i32
    %c0_i32_0 = arith.constant 0 : i32
    %c0_i32_1 = arith.constant 0 : i32
    return %c0_i32, %c0_i32_0 : i32, i32
  }
  func.func @transform_20(%arg0: i32) -> (i32, i32) {
    %c0_i32 = arith.constant 0 : i32
    %c0_i32_0 = arith.constant 0 : i32
    %c0_i32_1 = arith.constant 0 : i32
    return %c0_i32, %c0_i32_0 : i32, i32
  }
  func.func @transform_21(%arg0: i32) -> (i32, i32) {
    %c0_i32 = arith.constant 0 : i32
    %c0_i32_0 = arith.constant 0 : i32
    %c0_i32_1 = arith.constant 0 : i32
    return %c0_i32, %c0_i32_0 : i32, i32
  }
}

</mosaic_0001>

<bundles_post_ra>
// kernel: tpu_custom_call.1
= control target key start
LH: loop header
LB: loop body
LE: loop exit
PB: predicated region body
PF: predicated region fallthrough
CT: control target
= control target key end

     0   :  { %s3146_s0 = inlined_call_operand.vmem [shape: f32[128,128], index: 0, kind: input, shape index: {}]   ;;  %s3147_s1 = inlined_call_operand.vmem [shape: f32[128,1], index: 1, kind: input, shape index: {}]   ;;  %s3148_s2 = inlined_call_operand.vmem [shape: f32[128,1], index: 2, kind: input, shape index: {}]   ;;  %s3149_s3 = inlined_call_operand.vmem [shape: bf16[128,16], index: 3, kind: input, shape index: {}]   ;;  %s3150_s4 = inlined_call_operand.vmem [shape: bf16[128,8], index: 4, kind: input, shape index: {}]   ;;  %s3151_s5 = inlined_call_operand.vmem [shape: f32[16,128], index: 5, kind: input, shape index: {}]   ;;  %s3152_s6 = inlined_call_operand.vmem [shape: f32[1,128], index: 6, kind: input, shape index: {}]   ;;  %s3153_s7 = inlined_call_operand.vmem [shape: f32[1,128], index: 7, kind: input, shape index: {}]   ;;  %s3154_s8 = inlined_call_operand.vmem [shape: f32[1,128], index: 8, kind: input, shape index: {}]   ;;  %s3155_s9 = inlined_call_operand.vmem [shape: bf16[40,16], index: 9, kind: input, shape index: {}]   ;;  %s3156_s10 = inlined_call_operand.vmem [shape: f32[40,1], index: 10, kind: input, shape index: {}]   ;;  %s3157_s11 = inlined_call_operand.vmem [shape: f32[16,1], index: 11, kind: input, shape index: {}]   ;;  %s3158_s12 = inlined_call_operand.vmem [shape: f32[8,1], index: 12, kind: input, shape index: {}]   ;;  %s3159_s13 = inlined_call_operand.vmem [shape: f32[40,1], index: 13, kind: input, shape index: {}]   ;;  %s3160_s14 = inlined_call_operand.vmem [shape: bf16[128,128], index: 14, kind: input, shape index: {}]   ;;  %s3161_s15 = inlined_call_operand.vmem [shape: bf16[128,128], index: 15, kind: input, shape index: {}]   ;;  %s3162_s16 = inlined_call_operand.vmem [shape: bf16[128,128], index: 16, kind: input, shape index: {}]   ;;  %s3163_s17 = inlined_call_operand.vmem [shape: f32[1,128], index: 17, kind: input, shape index: {}]   ;;  %s3164_s18 = inlined_call_operand.vmem [shape: bf16[128,128], index: 18, kind: input, shape index: {}]   ;;  %s3165_s19 = inlined_call_operand.vmem [shape: f32[1,128], index: 19, kind: input, shape index: {}]   ;;  %s3166_s20 = inlined_call_operand.hbm [shape: f32[40,128], index: 20, kind: output, shape index: {0}]   ;;  %s3167_s21 = inlined_call_operand.hbm [shape: f32[8,128], index: 21, kind: output, shape index: {1}]  }
   0x1   :  { %3173 = sst [smem:[#allocation11_spill]] %s3146_s0 }
   0x2   :  { %3174 = sst [smem:[#allocation12_spill]] %s3147_s1 }
   0x3   :  { %3175 = sst [smem:[#allocation13_spill]] %s3148_s2 }
   0x4   :  { %3176 = sst [smem:[#allocation14_spill]] %s3149_s3 }
   0x5   :  { %3177 = sst [smem:[#allocation15_spill]] %s3150_s4 }
   0x6   :  { %3178 = sst [smem:[#allocation16_spill]] %s3151_s5 }
   0x7   :  { %3179 = sst [smem:[#allocation17_spill]] %s3161_s15 }
   0x8   :  { %3180 = sst [smem:[#allocation18_spill]] %s3162_s16 }
   0x9   :  { %3181 = sst [smem:[#allocation19_spill]] %s3163_s17 }
   0xa   :  { %3182 = sst [smem:[#allocation20_spill]] %s3164_s18 }
   0xb   :  { %3183 = sst [smem:[#allocation21_spill]] %s3165_s19 }
   0xc   :  { %3184 = sst [smem:[#allocation22_spill]] %s3166_s20 }
   0xd   :  { %3185 = sst [smem:[#allocation23_spill]] %s3167_s21 }
   0xe   :  { %27 = vsyncpa [#allocation5], 0 }
   0xf   :  { %28 = vsyncpa [#allocation7], 0  ;;  %s2721_s2 = smov 0  }
  0x10 LB: > { %3186 = sst [smem:[#allocation10_spill]] %s2598_s2  ;;  %s2727_s25 = sadd.s32 4294967295, %s2598_s2   ;;  %s2598_s2 = sphi %s2721_s2, %s34_s2  }
  0x11   : > { %p2065_p0 = scmp.ge.s32.totalorder %s2598_s2, 1  ;;  %p627_p1 = scmp.lt.s32.totalorder %s2598_s2, 5 }
  0x13   : > { %p628_p2 = pnand %p2065_p0, %p627_p1 }
  0x14   : > { %s2066_s26 = sshll.u32 (!%p628_p2), %s2727_s25, 2  ;;  %s3187_s0 = sld [smem:[#allocation11_spill]] (!%p628_p2) }
  0x15   : > { %631 = sbr.rel (%p628_p2) target bundleno = 1815 (0x717), region = 100  ;;  %p703_p3 = scmp.lt.s32.totalorder (!%p628_p2), %s2066_s26, 15 }
  0x16   : > { %s3188_s22 = sld [smem:[#allocation12_spill]] (!%p628_p2)  ;;  %p2076_p4 = scmp.ne.s32.totalorder (!%p628_p2), %s2727_s25, 0 }
  0x17   : > { %s3189_s2 = sld [smem:[#allocation13_spill]] (!%p628_p2) }
  0x18   : > { %s3190_s17 = sld [smem:[#allocation14_spill]] (!%p628_p2) }
  0x19   : > { %s3191_s15 = sld [smem:[#allocation15_spill]] (!%p628_p2) }
  0x1a   : > { %s3202_s26 = smov (!%p703_p3, %s2066_s26), 15 }
  0x1b   : > { %s2067_s27 = sshll.u32 %s3202_s26, 3  ;;  %s2073_s3 = sshll.u32 %s3202_s26, 2 }
  0x1c   : > { %s2735_s4 = scalar_lea.vmem %s3187_s0, %s2067_s27  ;;  %s2740_s23 = scalar_lea.vmem %s3188_s22, %s2067_s27 }
  0x1d   : > { %s718_s21 = scalar_lea.vmem %s3189_s2, %s2067_s27  ;;  %736 = sbr.rel (%p2076_p4) target bundleno = 37 (0x25), region = 104 }
  0x1e   : > { %s2748_s18 = scalar_lea.vmem %s3190_s17, %s2073_s3 }
  0x1f   : > { %s2753_s28 = scalar_lea.vmem %s3191_s15, %s2073_s3 }
  0x22   : > { %v2600_v0 = vmov 0.0  }
  0x23   : > { %737 = vst [vmem:[#allocation2] sm:$0xff] %v2600_v0  ;;  %738 = vst [vmem:[#allocation2 + $0x8] sm:$0xff] %v2600_v0 }
  0x24   : > { %739 = vst [vmem:[#allocation3] sm:$0xff] %v2600_v0 }
  0x25 PF: > { %v755_v1 = vld [vmem:[%s718_s21 + $0x10] sm:$0xff]  ;;  %v756_v3 = vld [vmem:[%s718_s21 + $0x18] sm:$0xff]  ;;  %v2601_v4 = vmov 0   ;;  %v753_v8 = vld [vmem:[%s718_s21] sm:$0xff]  ;;  %v2602_v16 = vmov 0.0   ;;  %vm2603_vm8 = vmmov 0  }
  0x26   : > { %v746_v2 = vld [vmem:[%s2740_s23 + $0x10] sm:$0xff]  ;;  %2454 = vset.pattern.permute.xlu1 %v2601_v4  ;;  %2453 = vset.pattern.permute.xlu0 %v2601_v4  ;;  %vm759_vm0 = vcmp.gt.f32.partialorder %v755_v1, 0.0  ;;  %vm760_vm2 = vcmp.gt.f32.partialorder %v756_v3, 0.0  ;;  %v747_v5 = vld [vmem:[%s2740_s23 + $0x18] sm:$0xff]  ;;  %v754_v9 = vld [vmem:[%s718_s21 + $0x8] sm:$0xff]  ;;  %vm757_vm4 = vcmp.gt.f32.partialorder %v753_v8, 0.0 }
  0x27   : > { %vm750_vm1 = vcmp.gt.f32.partialorder %v746_v2, 0.0  ;;  %v764_v6 = vsel %vm759_vm0, 1, %v2601_v4  ;;  %vm751_vm3 = vcmp.gt.f32.partialorder %v747_v5, 0.0  ;;  %v765_v10 = vsel %vm760_vm2, 1, %v2601_v4  ;;  %v745_v12 = vld [vmem:[%s2740_s23 + $0x8] sm:$0xff]  ;;  %v744_v13 = vld [vmem:[%s2740_s23] sm:$0xff]  ;;  %2228 = vmatprep.subr.bf16.mxu0 %v2602_v16  ;;  %2236 = vmatprep.subr.bf16.mxu1 %v2602_v16 }
  0x28   : > { %v794_v7 = vsel %vm750_vm1, 1, %v2601_v4  ;;  %773 = vperm.xlu0 %2453, %v764_v6   ;;  %v795_v11 = vsel %vm751_vm3, 1, %v2601_v4  ;;  %vm758_vm5 = vcmp.gt.f32.partialorder %v754_v9, 0.0  ;;  %v762_v14 = vsel %vm757_vm4, 1, %v2601_v4  ;;  %v742_v17 = vld [vmem:[%s2735_s4 + $0x10] sm:$0xff]  ;;  %v743_v18 = vld [vmem:[%s2735_s4 + $0x18] sm:$0xff]  ;;  %2232 = vmatprep.mubr.msk.bf16.mxu0 %vm2603_vm8, %v2602_v16 }
  0x29   : > { %803 = vperm.xlu1 %2454, %v794_v7   ;;  %v763_v15 = vsel %vm758_vm5, 1, %v2601_v4  ;;  %vm749_vm6 = vcmp.gt.f32.partialorder %v745_v12, 0.0  ;;  %vm748_vm7 = vcmp.gt.f32.partialorder %v744_v13, 0.0  ;;  %v913_v21 = vpack.c.bf16 %v743_v18, %v742_v17  ;;  %v740_v22 = vld [vmem:[%s2735_s4] sm:$0xff]  ;;  %v741_v23 = vld [vmem:[%s2735_s4 + $0x8] sm:$0xff]  ;;  %2240 = vmatprep.mubr.msk.bf16.mxu1 %vm2603_vm8, %v2602_v16  ;;  %p2085_p5 = scmp.ne.s32.totalorder %s2727_s25, 3 }
  0x2a   : > { %v793_v19 = vsel %vm749_vm6, 1, %v2601_v4  ;;  %v792_v20 = vsel %vm748_vm7, 1, %v2601_v4  ;;  %v912_v24 = vpack.c.bf16 %v741_v23, %v740_v22  ;;  %v2455_v25 = vld [vmem:[%s2748_s18] sm:$0xff]   ;;  %v2457_v26 = vld [vmem:[%s2748_s18 + $0x8] sm:$0xff]   ;;  %vm858_vm1 = vcmask 261120   ;;  %s3192_s22 = sld [smem:[#allocation16_spill]] (!%p2085_p5) }
  0x2b   : > { %2237 = vmatpush3.bf16.msra.mxu1 %v913_v21  ;;  %v2456_v27 = vld [vmem:[%s2753_s28] sm:$0xff]   ;;  %v2458_v28 = vld [vmem:[%s2753_s28 + $0x8] sm:$0xff]   ;;  %v907_v54 = vld [vmem:[#allocation3] sm:$0xff]  ;;  %s3193_s23 = sld [smem:[#allocation17_spill]] (!%p2085_p5) }
  0x2c   : > { %776 = vperm.xlu0 %2453, %v765_v10   ;;  %2238 = vmatprep.subr.bf16.mxu1 %v2602_v16  ;;  %v2077_v31 = vld [vmem:[%s3153_s7] ss:$0 sm:$0xff]  ;;  %v823_v56 = vld [vmem:[#allocation2 + $0x8] sm:$0xff]  ;;  %s3194_s16 = sld [smem:[#allocation18_spill]] (!%p2085_p5) }
  0x2d   : > { %806 = vperm.xlu1 %2454, %v795_v11   ;;  %v2078_v35 = vld [vmem:[%s3152_s6] ss:$0 sm:$0xff]  ;;  %s3195_s28 = sld [smem:[#allocation20_spill]] (!%p2085_p5) }
  0x2e   : > { %v822_v51 = vld [vmem:[#allocation2] sm:$0xff]  ;;  %s3196_s26 = sld [smem:[#allocation19_spill]] (!%p2085_p5) }
  0x2f   : > { %2239 = vmatpush3.bf16.msra.mxu1 %v912_v24  ;;  %s3197_s19 = sld [smem:[#allocation21_spill]] (!%p2085_p5) }
  0x30   : > { %767 = vperm.xlu0 %2453, %v762_v14  }
  0x31   : > { %770 = vperm.xlu1 %2454, %v763_v15  }
  0x34   : > { %797 = vperm.xlu0 %2453, %v792_v20  }
  0x35   : > { %800 = vperm.xlu1 %2454, %v793_v19  }
  0x52   : > { %842 = vxpose.xlu0.c.b16.start [1/2] (short) (narrow) %v2455_v25, 16 }
  0x56   : > { %843 = vxpose.xlu0.c.b16.end [2/2] (short) (narrow) %v2457_v26, 16 }
  0x58   : > { %926 = vxpose.xlu1.c.b16.start [1/2] (short) (narrow) %v2456_v27, 16 }
  0x5c   : > { %927 = vxpose.xlu1.c.b16.end [2/2] (short) (narrow) %v2458_v28, 16 }
  0xa3   : > { %v774_v29 = vpop.permute.xlu0 %773 }
  0xa4   : > { %v804_v30 = vpop.permute.xlu1 %803  ;;  %vm780_vm9 = vcmp.eq.s32.totalorder %v774_v29, 1 }
  0xa5   : > { %v790_v32 = vsel %vm780_vm9, %v2077_v31, %v742_v17  ;;  %vm810_vm10 = vcmp.eq.s32.totalorder %v804_v30, 1 }
  0xa6   : > { %v820_v37 = vsel %vm810_vm10, %v2078_v35, %v790_v32 }
  0xa7   : > { %v777_v33 = vpop.permute.xlu0 %776 }
  0xa8   : > { %v807_v34 = vpop.permute.xlu1 %806  ;;  %vm781_vm11 = vcmp.eq.s32.totalorder %v777_v33, 1 }
  0xa9   : > { %vm811_vm12 = vcmp.eq.s32.totalorder %v807_v34, 1  ;;  %v791_v36 = vsel %vm781_vm11, %v2077_v31, %v743_v18 }
  0xaa   : > { %v821_v38 = vsel %vm811_vm12, %v2078_v35, %v791_v36 }
  0xab   : > { %v768_v39 = vpop.permute.xlu0 %767  ;;  %v829_v41 = vpack.c.bf16 %v821_v38, %v820_v37 }
  0xac   : > { %v771_v40 = vpop.permute.xlu1 %770  ;;  %vm778_vm13 = vcmp.eq.s32.totalorder %v768_v39, 1 }
  0xad   : > { %vm779_vm14 = vcmp.eq.s32.totalorder %v771_v40, 1  ;;  %2229 = vmatpush3.bf16.msra.mxu0 %v829_v41  ;;  %v788_v44 = vsel %vm778_vm13, %v2077_v31, %v740_v22 }
  0xae   : > { %2230 = vmatprep.subr.bf16.mxu0 %v2602_v16  ;;  %v789_v45 = vsel %vm779_vm14, %v2077_v31, %v741_v23 }
  0xaf   : > { %v798_v43 = vpop.permute.xlu0 %797 }
  0xb0   : > { %v801_v42 = vpop.permute.xlu1 %800  ;;  %vm808_vm0 = vcmp.eq.s32.totalorder %v798_v43, 1 }
  0xb1   : > { %vm809_vm15 = vcmp.eq.s32.totalorder %v801_v42, 1  ;;  %v818_v47 = vsel %vm808_vm0, %v2078_v35, %v788_v44 }
  0xb2   : > { %v819_v46 = vsel %vm809_vm15, %v2078_v35, %v789_v45 }
  0xb3   : > { %v828_v48 = vpack.c.bf16 %v819_v46, %v818_v47 }
  0xb4   : > { %v850_v49 = vpop.trf.xlu0 }
  0xb5   : > { %2231 = vmatpush3.bf16.msra.mxu0 %v828_v48 }
  0xb8   : > { %2233 = vmatmul.mubr.msk.bf16.vlgmr.msra.gmra.mxu0 %vm858_vm1, %v850_v49 }
  0xba   : > { %v934_v50 = vpop.trf.xlu1 }
  0xbb   : > { %2241 = vmatmul.mubr.msk.bf16.vlgmr.msra.gmra.mxu1 %vm858_vm1, %v934_v50 }
 0x178   : > { %v896_v52 = vpop.f32.mrf.mxu0 }
 0x179   : > { %v903_v53 = vadd.f32 %v896_v52, %v822_v51 }
 0x17a   : > { %v2234_v55 = vpop.f32.mrf.mxu0 }
 0x17b   : > { %905 = vst [vmem:[#allocation2] sm:$0xff] %v903_v53  ;;  %v979_v57 = vpop.f32.mrf.mxu1 }
 0x17c   : > { %v985_v58 = vadd.f32 %v979_v57, %v907_v54  ;;  %v899_v59 = vpop.f32.mrf.mxu0 }
 0x17d   : > { %v904_v60 = vadd.f32 %v899_v59, %v823_v56  ;;  %v2242_v61 = vpop.f32.mrf.mxu1  ;;  %990 = sbr.rel (%p2085_p5) target bundleno = 1779 (0x6f3), region = 108 }
 0x17e   : > { %986 = vst [vmem:[#allocation3] sm:$0xff] %v985_v58  ;;  %v2235_v62 = vpop.f32.mrf.mxu0 }
 0x17f   : > { %906 = vst [vmem:[#allocation2 + $0x8] sm:$0xff] %v904_v60  ;;  %v982_v63 = vpop.f32.mrf.mxu1 }
 0x181   : > { %v2243_v0 = vpop.f32.mrf.mxu1 }
 0x182   : > { %v1059_v1 = vld [vmem:[%s3157_s11] sm:$0xff]  ;;  %v2604_v3 = vmov 0   ;;  %v2605_v4 = vmov 0.0   ;;  %v1060_v5 = vld [vmem:[%s3157_s11 + $0x8] sm:$0xff]  ;;  %v2461_v6 = vld [vmem:[%s3160_s14 + $0x38] sm:$0xff]   ;;  %vm2606_vm3 = vmmov 0  }
 0x183   : > { %v1299_v2 = vld [vmem:[%s3156_s10] sm:$0xff]  ;;  %2459 = vset.pattern.permute.xlu0 %v2604_v3  ;;  %2244 = vmatprep.subr.bf16.mxu0 %v2605_v4  ;;  %v2462_v7 = vld [vmem:[%s3160_s14 + $0x30] sm:$0xff]   ;;  %v2463_v10 = vld [vmem:[%s3160_s14 + $0x28] sm:$0xff]   ;;  %vm1198_vm10 = vcmask 130048  }
 0x184   : > { %1063 = vperm.xlu0 %2459, %v1059_v1   ;;  %2264 = vmatprep.subr.bf16.mxu1 %v2605_v4  ;;  %vm1304_vm2 = vcmp.gt.f32.partialorder %v1299_v2, 0.0  ;;  %v1301_v8 = vld [vmem:[%s3156_s10 + $0x10] sm:$0xff]  ;;  %v2464_v13 = vld [vmem:[%s3160_s14 + $0x20] sm:$0xff]   ;;  %v2465_v14 = vld [vmem:[%s3160_s14 + $0x18] sm:$0xff]  }
 0x185   : > { %2460 = vset.pattern.permute.xlu1 %v2604_v3  ;;  %2245 = vmatpush3.bf16.msra.mxu0 %v2461_v6  ;;  %v1311_v9 = vsel %vm1304_vm2, 1, %v2604_v3  ;;  %vm1306_vm4 = vcmp.gt.f32.partialorder %v1301_v8, 0.0  ;;  %v1266_v11 = vld [vmem:[%s3159_s13 + $0x10] sm:$0xff]  ;;  %v1268_v15 = vld [vmem:[%s3159_s13 + $0x20] sm:$0xff]  ;;  %v2467_v18 = vld [vmem:[%s3160_s14 + $0x8] sm:$0xff]  }
 0x186   : > { %2246 = vmatprep.subr.bf16.mxu0 %v2605_v4  ;;  %2260 = vmatprep.mubr.msk.bf16.mxu0 %vm2606_vm3, %v2605_v4  ;;  %v1313_v12 = vsel %vm1306_vm4, 1, %v2604_v3  ;;  %v2466_v16 = vld [vmem:[%s3160_s14 + $0x10] sm:$0xff]   ;;  %v1526_v17 = vld [vmem:[%s3158_s12] sm:$0xff]  ;;  %v1058_v22 = vld [vmem:[#allocation2 + $0x8] sm:$0xff] }
 0x187   : > { %2266 = vmatprep.mubr.msk.bf16.mxu1 %vm2606_vm3, %v2605_v4  ;;  %v2468_v19 = vld [vmem:[%s3160_s14] sm:$0xff]   ;;  %v1074_v25 = vld [vmem:[%s3192_s22 + $0x8] sm:$0xff]  ;;  %v1525_v35 = vld [vmem:[#allocation3] sm:$0xff] }
 0x188   : > { %1068 = vperm.xlu0 %2459, %v1060_v5   ;;  %v1057_v21 = vld [vmem:[#allocation2] sm:$0xff]  ;;  %v1300_v42 = vld [vmem:[%s3156_s10 + $0x8] sm:$0xff]  ;;  %v1302_v45 = vld [vmem:[%s3156_s10 + $0x18] sm:$0xff] }
 0x189   : > { %2247 = vmatpush3.bf16.msra.mxu0 %v2462_v7  ;;  %v1073_v24 = vld [vmem:[%s3192_s22] sm:$0xff]  ;;  %v1265_v43 = vld [vmem:[%s3159_s13 + $0x8] sm:$0xff]  ;;  %vm1305_vm5 = vcmp.gt.f32.partialorder %v1300_v42, 0.0  ;;  %v1267_v46 = vld [vmem:[%s3159_s13 + $0x18] sm:$0xff]  ;;  %vm1307_vm6 = vcmp.gt.f32.partialorder %v1302_v45, 0.0 }
 0x18a   : > { %2248 = vmatprep.subr.bf16.mxu0 %v2605_v4  ;;  %v2117_v38 = vld [vmem:[%s3154_s8] ss:$0 sm:$0xff]  ;;  %v1312_v44 = vsel %vm1305_vm5, 1, %v2604_v3  ;;  %v1314_v48 = vsel %vm1307_vm6, 1, %v2604_v3  ;;  %v2472_v2 = vld [vmem:[%s3193_s23 + $0x38] sm:$0xff]   ;;  %v2473_v5 = vld [vmem:[%s3193_s23 + $0x30] sm:$0xff]  }
 0x18b   : > { %v1264_v41 = vld [vmem:[%s3159_s13] sm:$0xff] }
 0x18c   : > { %1317 = vperm.xlu0 %2459, %v1311_v9   ;;  %1271 = vperm.xlu1 %2460, %v1264_v41   ;;  %v1303_v47 = vld [vmem:[%s3156_s10 + $0x20] sm:$0xff]  ;;  %v2474_v9 = vld [vmem:[%s3193_s23 + $0x28] sm:$0xff]  }
 0x18d   : > { %2249 = vmatpush3.bf16.msra.mxu0 %v2463_v10  ;;  %vm1308_vm7 = vcmp.gt.f32.partialorder %v1303_v47, 0.0  ;;  %v2469_v1 = vld [vmem:[%s3155_s9] sm:$0xff]  }
 0x18e   : > { %2250 = vmatprep.subr.bf16.mxu0 %v2605_v4  ;;  %v1315_v49 = vsel %vm1308_vm7, 1, %v2604_v3 }
 0x190   : > { %1281 = vperm.xlu0 %2459, %v1266_v11   ;;  %1276 = vperm.xlu1 %2460, %v1265_v43   ;;  %v2475_v11 = vld [vmem:[%s3193_s23 + $0x20] sm:$0xff]  }
 0x191   : > { %2251 = vmatpush3.bf16.msra.mxu0 %v2464_v13 }
 0x192   : > { %2252 = vmatprep.subr.bf16.mxu0 %v2605_v4 }
 0x194   : > { %1323 = vperm.xlu0 %2459, %v1313_v12   ;;  %1320 = vperm.xlu1 %2460, %v1312_v44   ;;  %v2471_v12 = vld [vmem:[%s3155_s9 + $0x10] ss:$0 sps:$4 sm:$0xff]  }
 0x195   : > { %2253 = vmatpush3.bf16.msra.mxu0 %v2465_v14 }
 0x196   : > { %2254 = vmatprep.subr.bf16.mxu0 %v2605_v4 }
 0x198   : > { %1291 = vperm.xlu0 %2459, %v1268_v15   ;;  %1286 = vperm.xlu1 %2460, %v1267_v46   ;;  %v2478_v15 = vld [vmem:[%s3193_s23 + $0x8] sm:$0xff]  }
 0x199   : > { %2255 = vmatpush3.bf16.msra.mxu0 %v2466_v16 }
 0x19a   : > { %2256 = vmatprep.subr.bf16.mxu0 %v2605_v4 }
 0x19c   : > { %1529 = vperm.xlu0 %2459, %v1526_v17   ;;  %1326 = vperm.xlu1 %2460, %v1314_v48  }
 0x19d   : > { %2257 = vmatpush3.bf16.msra.mxu0 %v2467_v18 }
 0x19e   : > { %2258 = vmatprep.subr.bf16.mxu0 %v2605_v4 }
 0x1a0   : > { %1329 = vperm.xlu1 %2460, %v1315_v49  }
 0x1a1   : > { %2259 = vmatpush3.bf16.msra.mxu0 %v2468_v19 }
 0x1a2   : > { %2306 = vmatprep.subr.bf16.mxu0 %v2605_v4 }
 0x1ff   : > { %v1064_v20 = vpop.permute.xlu0 %1063 }
 0x200   : > { %v1071_v23 = vmul.f32 %v1064_v20, %v1057_v21 }
 0x202   : > { %v1075_v28 = vadd.f32 %v1073_v24, %v1071_v23  ;;  %v2102_v23 = vld [vmem:[%s3152_s6] ss:$0 sm:$0xff] }
 0x203   : > { %v1069_v26 = vpop.permute.xlu0 %1068  ;;  %v2103_v24 = vld [vmem:[%s3153_s7] ss:$0 sm:$0xff] }
 0x204   : > { %v1072_v27 = vmul.f32 %v1069_v26, %v1058_v22 }
 0x206   : > { %v1076_v29 = vadd.f32 %v1074_v25, %v1072_v27 }
 0x207   : > { %v2844_v30 = vpop.permute.xlu0 %1317  ;;  %v1272_v17 = vpop.permute.xlu1 %1271 }
 0x208   : > { %v1077_v31 = vpack.c.bf16 %v1076_v29, %v1075_v28  ;;  %vm1331_vm11 = vcmp.eq.s32.totalorder %v2844_v30, 1 }
 0x209   : > { %v1348_v28 = vsel %vm1331_vm11, %v2102_v23, %v2103_v24 }
 0x20a   : > { %2261 = vmatmul.mubr.bf16.vlgmr.msra.gmra.mxu0 %v1077_v31 }
 0x20b   : > { %2307 = vmatpush3.bf16.msra.mxu0 %v2461_v6  ;;  %v2846_v32 = vpop.permute.xlu0 %1281  ;;  %2322 = vmatprep.mubr.msk.bf16.mxu0 %vm2606_vm3, %v2605_v4 }
 0x20c   : > { %2308 = vmatprep.subr.bf16.mxu0 %v2605_v4 }
 0x20f   : > { %2309 = vmatpush3.bf16.msra.mxu0 %v2462_v7  ;;  %v2852_v33 = vpop.permute.xlu0 %1323  ;;  %v2470_v7 = vld [vmem:[%s3155_s9 + $0x8] sm:$0xff]  }
 0x210   : > { %2310 = vmatprep.subr.bf16.mxu0 %v2605_v4  ;;  %vm1333_vm13 = vcmp.eq.s32.totalorder %v2852_v33, 1 }
 0x211   : > { %v1350_v43 = vsel %vm1333_vm13, %v2102_v23, %v2103_v24 }
 0x213   : > { %2311 = vmatpush3.bf16.msra.mxu0 %v2463_v10  ;;  %v2855_v34 = vpop.permute.xlu0 %1291 }
 0x214   : > { %2312 = vmatprep.subr.bf16.mxu0 %v2605_v4 }
 0x217   : > { %2313 = vmatpush3.bf16.msra.mxu0 %v2464_v13  ;;  %v1530_v36 = vpop.permute.xlu0 %1529  ;;  %v2476_v13 = vld [vmem:[%s3193_s23 + $0x18] sm:$0xff]  }
 0x218   : > { %2314 = vmatprep.subr.bf16.mxu0 %v2605_v4  ;;  %v1532_v37 = vmul.f32 %v1530_v36, %v1525_v35 }
 0x21a   : > { %v1540_v39 = vadd.f32 %v2117_v38, %v1532_v37 }
 0x21b   : > { %2315 = vmatpush3.bf16.msra.mxu0 %v2465_v14  ;;  %v2477_v14 = vld [vmem:[%s3193_s23 + $0x10] sm:$0xff]  }
 0x21c   : > { %2316 = vmatprep.subr.bf16.mxu0 %v2605_v4  ;;  %v1541_v40 = vpack.c.bf16 %v1540_v39, %v1540_v39 }
 0x21f   : > { %2317 = vmatpush3.bf16.msra.mxu0 %v2466_v16  ;;  %v2479_v16 = vld [vmem:[%s3193_s23] sm:$0xff]  }
 0x220   : > { %2318 = vmatprep.subr.bf16.mxu0 %v2605_v4 }
 0x223   : > { %2319 = vmatpush3.bf16.msra.mxu0 %v2467_v18  ;;  %v1277_v18 = vpop.permute.xlu1 %1276 }
 0x224   : > { %2320 = vmatprep.subr.bf16.mxu0 %v2605_v4 }
 0x227   : > { %2321 = vmatpush3.bf16.msra.mxu0 %v2468_v19  ;;  %v1321_v19 = vpop.permute.xlu1 %1320 }
 0x228   : > { %2354 = vmatprep.subr.bf16.mxu0 %v2605_v4  ;;  %vm1332_vm12 = vcmp.eq.s32.totalorder %v1321_v19, 1 }
 0x229   : > { %v1349_v29 = vsel %vm1332_vm12, %v2102_v23, %v2103_v24 }
 0x22a   : > { %2323 = vmatmul.mubr.bf16.vlgmr.msra.gmra.mxu0 %v1541_v40 }
 0x22b   : > { %2370 = vmatprep.mubr.msk.bf16.mxu0 %vm2606_vm3, %v2605_v4  ;;  %v1287_v21 = vpop.permute.xlu1 %1286 }
 0x22f   : > { %v1327_v37 = vpop.permute.xlu1 %1326 }
 0x230   : > { %vm1334_vm14 = vcmp.eq.s32.totalorder %v1327_v37, 1 }
 0x231   : > { %v1351_v44 = vsel %vm1334_vm14, %v2102_v23, %v2103_v24 }
 0x233   : > { %v1330_v45 = vpop.permute.xlu1 %1329 }
 0x234   : > { %vm1335_vm15 = vcmp.eq.s32.totalorder %v1330_v45, 1  ;;  %v2483_v45 = vld [vmem:[%s3194_s16 + $0x20] sm:$0xff]  }
 0x2ca   : > { %v1160_v50 = vpop.f32.mrf.mxu0 }
 0x2cb   : > { %v1169_v51 = vmin.f32 %v1160_v50, 0.0  ;;  %vm1167_vm8 = vcmp.gt.f32.partialorder %v1160_v50, 0.0 }
 0x2cc   : > { %v2262_v52 = vpop.f32.mrf.mxu0 }
 0x2cd   : > { %v1171_v53 = vmul.f32 1.442695, %v1169_v51 }
 0x2ce   : > { %v1163_v54 = vpop.f32.mrf.mxu0 }
 0x2cf   : > { %2496 = vpow2.f32 %v1171_v53  ;;  %v1170_v55 = vmin.f32 %v1163_v54, 0.0  ;;  %vm1168_vm9 = vcmp.gt.f32.partialorder %v1163_v54, 0.0 }
 0x2d0   : > { %v2263_v56 = vpop.f32.mrf.mxu0 }
 0x2d1   : > { %v1173_v57 = vmul.f32 1.442695, %v1170_v55  ;;  %v2960_v56 = vld [vmem:[%s3194_s16 + $0x38] sm:$0xff]  }
 0x2d3   : > { %2498 = vpow2.f32 %v1173_v57 }
 0x2dc   : > { %v2497_v58 = vpop.eup %2496 }
 0x2dd   : > { %v2094_v59 = vadd.f32 -1.0, %v2497_v58 }
 0x2df   : > { %v1177_v62 = vsel %vm1167_vm8, %v1160_v50, %v2094_v59 }
 0x2e0   : > { %v2499_v60 = vpop.eup %2498 }
 0x2e1   : > { %v2095_v61 = vadd.f32 -1.0, %v2499_v60 }
 0x2e3   : > { %v1178_v63 = vsel %vm1168_vm9, %v1163_v54, %v2095_v61 }
 0x2e4   : > { %v1184_v0 = vpack.c.bf16 %v1178_v63, %v1177_v62 }
 0x2e6   : > { %2265 = vmatpush3.bf16.msra.mxu1 %v1184_v0 }
 0x2e7   : > { %2278 = vmatprep.subr.bf16.mxu1 %v2605_v4 }
 0x2e9   : > { %2267 = vmatmul.mubr.msk.bf16.vlgmr.msra.gmra.mxu1 %vm1198_vm10, %v2469_v1 }
 0x2ea   : > { %v2896_v3 = vpop.f32.mrf.mxu0  ;;  %2270 = vmatprep.mubr.msk.bf16.mxu1 %vm2606_vm3, %v2605_v4  ;;  %2279 = vmatpush3.bf16.msra.mxu1 %v2472_v2 }
 0x2eb   : > { %2280 = vmatprep.subr.bf16.mxu1 %v2605_v4  ;;  %v1583_v0 = vmin.f32 %v2896_v3, 0.0  ;;  %vm1582_vm5 = vcmp.gt.f32.partialorder %v2896_v3, 0.0 }
 0x2ec   : > { %v2324_v6 = vpop.f32.mrf.mxu0 }
 0x2ee   : > { %v1579_v8 = vpop.f32.mrf.mxu0  ;;  %2281 = vmatpush3.bf16.msra.mxu1 %v2473_v5 }
 0x2ef   : > { %2282 = vmatprep.subr.bf16.mxu1 %v2605_v4 }
 0x2f0   : > { %v2325_v10 = vpop.f32.mrf.mxu0 }
 0x2f1   : > { %2271 = vmatmul.mubr.msk.bf16.gmra.mxu1 %vm1198_vm10, %v2470_v7  ;;  %v1584_v7 = vmul.f32 1.442695, %v1583_v0 }
 0x2f2   : > { %2274 = vmatprep.mubr.msk.bf16.mxu1 %vm2606_vm3, %v2605_v4  ;;  %2283 = vmatpush3.bf16.msra.mxu1 %v2474_v9 }
 0x2f3   : > { %2284 = vmatprep.subr.bf16.mxu1 %v2605_v4 }
 0x2f6   : > { %2285 = vmatpush3.bf16.msra.mxu1 %v2475_v11 }
 0x2f7   : > { %2286 = vmatprep.subr.bf16.mxu1 %v2605_v4 }
 0x2f9   : > { %2275 = vmatmul.mubr.msk.bf16.gmra.mxu1 %vm1198_vm10, %v2471_v12 }
 0x2fa   : > { %2287 = vmatpush3.bf16.msra.mxu1 %v2476_v13  ;;  %2294 = vmatprep.mubr.msk.bf16.mxu1 %vm2606_vm3, %v2605_v4 }
 0x2fb   : > { %2288 = vmatprep.subr.bf16.mxu1 %v2605_v4 }
 0x2fe   : > { %2289 = vmatpush3.bf16.msra.mxu1 %v2477_v14 }
 0x2ff   : > { %2290 = vmatprep.subr.bf16.mxu1 %v2605_v4 }
 0x302   : > { %2291 = vmatpush3.bf16.msra.mxu1 %v2478_v15 }
 0x303   : > { %2292 = vmatprep.subr.bf16.mxu1 %v2605_v4 }
 0x306   : > { %2293 = vmatpush3.bf16.msra.mxu1 %v2479_v16 }
 0x307   : > { %2326 = vmatprep.subr.bf16.mxu1 %v2605_v4 }
 0x3a9   : > { %v1242_v20 = vpop.f32.mrf.mxu1 }
 0x3aa   : > { %v1294_v25 = vmul.f32 %v1272_v17, %v1242_v20 }
 0x3ab   : > { %v2268_v22 = vpop.f32.mrf.mxu1 }
 0x3ac   : > { %v1353_v35 = vadd.f32 %v1348_v28, %v1294_v25 }
 0x3ad   : > { %v1245_v26 = vpop.f32.mrf.mxu1 }
 0x3ae   : > { %v1295_v27 = vmul.f32 %v1277_v18, %v1245_v26 }
 0x3af   : > { %v2269_v31 = vpop.f32.mrf.mxu1 }
 0x3b0   : > { %v1354_v36 = vadd.f32 %v1349_v29, %v1295_v27 }
 0x3b1   : > { %v1250_v38 = vpop.f32.mrf.mxu1 }
 0x3b2   : > { %v1358_v39 = vpack.c.bf16 %v1354_v36, %v1353_v35  ;;  %v1296_v41 = vmul.f32 %v2846_v32, %v1250_v38  ;;  %v1352_v32 = vsel %vm1335_vm15, %v2102_v23, %v2103_v24 }
 0x3b3   : > { %v2272_v40 = vpop.f32.mrf.mxu1 }
 0x3b4   : > { %2295 = vmatmul.mubr.bf16.vlgmr.msra.gmra.mxu1 %v1358_v39  ;;  %v1355_v47 = vadd.f32 %v1350_v43, %v1296_v41  ;;  %v2987_v40 = vld [vmem:[%s3194_s16 + $0x28] sm:$0xff]  }
 0x3b5   : > { %v1253_v30 = vpop.f32.mrf.mxu1  ;;  %2298 = vmatprep.mubr.msk.bf16.mxu1 %vm2606_vm3, %v2605_v4  ;;  %2327 = vmatpush3.bf16.msra.mxu1 %v2960_v56 }
 0x3b6   : > { %v1297_v42 = vmul.f32 %v1287_v21, %v1253_v30  ;;  %2328 = vmatprep.subr.bf16.mxu1 %v2605_v4 }
 0x3b7   : > { %v2273_v46 = vpop.f32.mrf.mxu1 }
 0x3b8   : > { %v1356_v48 = vadd.f32 %v1351_v44, %v1297_v42 }
 0x3b9   : > { %v1258_v49 = vpop.f32.mrf.mxu1 }
 0x3ba   : > { %v1298_v50 = vmul.f32 %v2855_v34, %v1258_v49  ;;  %v1359_v33 = vpack.c.bf16 %v1356_v48, %v1355_v47  ;;  %v2966_v34 = vld [vmem:[%s3194_s16 + $0x30] sm:$0xff]   ;;  %v2486_v49 = vld [vmem:[%s3194_s16 + $0x8] sm:$0xff]  }
 0x3bb   : > { %v2276_v51 = vpop.f32.mrf.mxu1  ;;  %2329 = vmatpush3.bf16.msra.mxu1 %v2966_v34  ;;  %v2485_v48 = vld [vmem:[%s3194_s16 + $0x10] sm:$0xff]  }
 0x3bc   : > { %2299 = vmatmul.mubr.bf16.gmra.mxu1 %v1359_v33  ;;  %v1357_v53 = vadd.f32 %v1352_v32, %v1298_v50  ;;  %2330 = vmatprep.subr.bf16.mxu1 %v2605_v4  ;;  %v2487_v50 = vld [vmem:[%s3194_s16] sm:$0xff]   ;;  %v3020_v33 = vld [vmem:[%s3195_s28 + $0x38] sm:$0xff]  }
 0x3bd   : > { %2302 = vmatprep.mubr.msk.bf16.mxu1 %vm2606_vm3, %v2605_v4  ;;  %v1261_v52 = vpop.f32.mrf.mxu1  ;;  %2355 = vmatpush3.bf16.msra.mxu0 %v3020_v33 }
 0x3be   : > { %v1360_v55 = vpack.c.bf16 %v1357_v53, %v1357_v53  ;;  %2356 = vmatprep.subr.bf16.mxu0 %v2605_v4 }
 0x3bf   : > { %v2277_v54 = vpop.f32.mrf.mxu1  ;;  %2331 = vmatpush3.bf16.msra.mxu1 %v2987_v40 }
 0x3c0   : > { %2332 = vmatprep.subr.bf16.mxu1 %v2605_v4 }
 0x3c3   : > { %2333 = vmatpush3.bf16.msra.mxu1 %v2483_v45 }
 0x3c4   : > { %2303 = vmatmul.mubr.bf16.gmra.mxu1 %v1360_v55  ;;  %2334 = vmatprep.subr.bf16.mxu1 %v2605_v4 }
 0x3c5   : > { %2342 = vmatprep.mubr.msk.bf16.mxu1 %vm2606_vm3, %v2605_v4 }
 0x474   : > { %v1443_v57 = vpop.f32.mrf.mxu1 }
 0x475   : > { %v1470_v58 = vmin.f32 %v1443_v57, 0.0  ;;  %vm1465_vm0 = vcmp.gt.f32.partialorder %v1443_v57, 0.0 }
 0x476   : > { %v2296_v59 = vpop.f32.mrf.mxu1 }
 0x477   : > { %v1475_v60 = vmul.f32 1.442695, %v1470_v58 }
 0x478   : > { %v1446_v61 = vpop.f32.mrf.mxu1 }
 0x479   : > { %2500 = vpow2.f32 %v1475_v60  ;;  %v1471_v62 = vmin.f32 %v1446_v61, 0.0  ;;  %vm1466_vm1 = vcmp.gt.f32.partialorder %v1446_v61, 0.0 }
 0x47a   : > { %v2297_v63 = vpop.f32.mrf.mxu1 }
 0x47b   : > { %v1477_v1 = vmul.f32 1.442695, %v1471_v62 }
 0x47c   : > { %v1451_v2 = vpop.f32.mrf.mxu1 }
 0x47d   : > { %2502 = vpow2.f32 %v1477_v1  ;;  %v1472_v5 = vmin.f32 %v1451_v2, 0.0  ;;  %vm1467_vm2 = vcmp.gt.f32.partialorder %v1451_v2, 0.0 }
 0x47e   : > { %v2300_v6 = vpop.f32.mrf.mxu1 }
 0x47f   : > { %v1479_v8 = vmul.f32 1.442695, %v1472_v5 }
 0x480   : > { %v1454_v9 = vpop.f32.mrf.mxu1 }
 0x481   : > { %2504 = vpow2.f32 %v1479_v8  ;;  %v1473_v10 = vmin.f32 %v1454_v9, 0.0  ;;  %vm1468_vm4 = vcmp.gt.f32.partialorder %v1454_v9, 0.0 }
 0x482   : > { %v2301_v11 = vpop.f32.mrf.mxu1  ;;  %2506 = vpow2.f32 %v1584_v7 }
 0x483   : > { %v1481_v12 = vmul.f32 1.442695, %v1473_v10 }
 0x484   : > { %v1459_v13 = vpop.f32.mrf.mxu1 }
 0x485   : > { %2508 = vpow2.f32 %v1481_v12  ;;  %v1474_v14 = vmin.f32 %v1459_v13, 0.0  ;;  %vm1469_vm6 = vcmp.gt.f32.partialorder %v1459_v13, 0.0 }
 0x486   : > { %v2501_v15 = vpop.eup %2500  ;;  %v2304_v16 = vpop.f32.mrf.mxu1 }
 0x487   : > { %v1483_v17 = vmul.f32 1.442695, %v1474_v14  ;;  %v2112_v18 = vadd.f32 -1.0, %v2501_v15  ;;  %v3047_v15 = vld [vmem:[%s3195_s28 + $0x30] sm:$0xff]   ;;  %v3054_v16 = vld [vmem:[%s3195_s28 + $0x28] sm:$0xff]  }
 0x488   : > { %v1462_v19 = vpop.f32.mrf.mxu1  ;;  %2357 = vmatpush3.bf16.msra.mxu0 %v3047_v15 }
 0x489   : > { %2510 = vpow2.f32 %v1483_v17  ;;  %v2972_v20 = vsel %vm1465_vm0, %v1443_v57, %v2112_v18  ;;  %2358 = vmatprep.subr.bf16.mxu0 %v2605_v4  ;;  %v3061_v17 = vld [vmem:[%s3195_s28 + $0x20] sm:$0xff]   ;;  %v3068_v18 = vld [vmem:[%s3195_s28 + $0x18] sm:$0xff]   ;;  %v3075_v19 = vld [vmem:[%s3195_s28 + $0x10] sm:$0xff]  }
 0x48a   : > { %v2503_v21 = vpop.eup %2502  ;;  %v2305_v22 = vpop.f32.mrf.mxu1  ;;  %v1495_v23 = vmul.f32 %v2972_v20, %v2972_v20 }
 0x48b   : > { %v2113_v24 = vadd.f32 -1.0, %v2503_v21  ;;  %v3089_v21 = vld [vmem:[%s3195_s28] sm:$0xff]  }
 0x48c   : > { %1500 = vadd.xlane.f32.xlu1 %v1495_v23  ;;  %2359 = vmatpush3.bf16.msra.mxu0 %v3054_v16  ;;  %v2119_v22 = vld [vmem:[%s3196_s26] ss:$0 sm:$0xff] }
 0x48d   : > { %v2976_v25 = vsel %vm1466_vm1, %v1446_v61, %v2113_v24  ;;  %2360 = vmatprep.subr.bf16.mxu0 %v2605_v4 }
 0x48e   : > { %v2505_v26 = vpop.eup %2504  ;;  %v1496_v27 = vmul.f32 %v2976_v25, %v2976_v25 }
 0x48f   : > { %v2114_v28 = vadd.f32 -1.0, %v2505_v26  ;;  %v2507_v29 = vpop.eup %2506 }
 0x490   : > { %1502 = vadd.xlane.f32.xlu0 %v1496_v27  ;;  %v2118_v38 = vadd.f32 -1.0, %v2507_v29  ;;  %2361 = vmatpush3.bf16.msra.mxu0 %v3061_v17 }
 0x491   : > { %v2980_v31 = vsel %vm1467_vm2, %v1451_v2, %v2114_v28  ;;  %2362 = vmatprep.subr.bf16.mxu0 %v2605_v4 }
 0x492   : > { %v2509_v35 = vpop.eup %2508  ;;  %v1497_v36 = vmul.f32 %v2980_v31, %v2980_v31  ;;  %v2991_v43 = vsel %vm1582_vm5, %v2896_v3, %v2118_v38  ;;  %v2484_v3 = vld [vmem:[%s3194_s16 + $0x18] sm:$0xff]  }
 0x493   : > { %v2115_v37 = vadd.f32 -1.0, %v2509_v35  ;;  %v1588_v47 = vmul.f32 %v2991_v43, %v2991_v43  ;;  %2335 = vmatpush3.bf16.msra.mxu1 %v2484_v3 }
 0x494   : > { %1504 = vadd.xlane.f32.xlu0 %v1497_v36  ;;  %2336 = vmatprep.subr.bf16.mxu1 %v2605_v4 }
 0x495   : > { %v1493_v39 = vsel %vm1468_vm4, %v1454_v9, %v2115_v37  ;;  %2363 = vmatpush3.bf16.msra.mxu0 %v3068_v18 }
 0x496   : > { %v2511_v41 = vpop.eup %2510  ;;  %v1498_v30 = vmul.f32 %v1493_v39, %v1493_v39  ;;  %2364 = vmatprep.subr.bf16.mxu0 %v2605_v4 }
 0x497   : > { %v2116_v42 = vadd.f32 -1.0, %v2511_v41  ;;  %2337 = vmatpush3.bf16.msra.mxu1 %v2485_v48 }
 0x498   : > { %1506 = vadd.xlane.f32.xlu1 %v1498_v30  ;;  %2338 = vmatprep.subr.bf16.mxu1 %v2605_v4 }
 0x499   : > { %v1494_v44 = vsel %vm1469_vm6, %v1459_v13, %v2116_v42  ;;  %2365 = vmatpush3.bf16.msra.mxu0 %v3075_v19 }
 0x49a   : > { %v1499_v46 = vmul.f32 %v1494_v44, %v1494_v44  ;;  %2366 = vmatprep.subr.bf16.mxu0 %v2605_v4 }
 0x49b   : > { %2339 = vmatpush3.bf16.msra.mxu1 %v2486_v49 }
 0x49c   : > { %1508 = vadd.xlane.f32.xlu0 %v1499_v46  ;;  %1589 = vadd.xlane.f32.xlu1 %v1588_v47 }
 0x49d   : > { %2340 = vmatprep.subr.bf16.mxu1 %v2605_v4 }
 0x49f   : > { %2341 = vmatpush3.bf16.msra.mxu1 %v2487_v50 }
 0x4a0   : > { %2382 = vmatprep.subr.bf16.mxu1 %v2605_v4 }
 0x515   : > { %v1501_v51 = vpop.xlane.xlu1 %1500 }
 0x516   : > { %v1510_v32 = vmax.f32 %v1501_v51, 1e-24 }
 0x518   : > { %2512 = vrsqrt.f32 %v1510_v32 }
 0x519   : > { %v1503_v52 = vpop.xlane.xlu0 %1502 }
 0x51a   : > { %v1511_v53 = vmax.f32 %v1503_v52, 1e-24 }
 0x51c   : > { %2514 = vrsqrt.f32 %v1511_v53 }
 0x51d   : > { %v1505_v54 = vpop.xlane.xlu0 %1504 }
 0x51e   : > { %v1512_v55 = vmax.f32 %v1505_v54, 1e-24 }
 0x520   : > { %2516 = vrsqrt.f32 %v1512_v55 }
 0x521   : > { %v1507_v57 = vpop.xlane.xlu1 %1506 }
 0x522   : > { %v1513_v58 = vmax.f32 %v1507_v57, 1e-24 }
 0x524   : > { %2518 = vrsqrt.f32 %v1513_v58 }
 0x525   : > { %v1509_v59 = vpop.xlane.xlu0 %1508  ;;  %v2513_v61 = vpop.eup %2512 }
 0x526   : > { %v1514_v60 = vmax.f32 %v1509_v59, 1e-24  ;;  %v1520_v63 = vmul.f32 %v2513_v61, %v2972_v20  ;;  %v1590_v6 = vpop.xlane.xlu1 %1589  ;;  %v3082_v20 = vld [vmem:[%s3195_s28 + $0x8] sm:$0xff]  }
 0x527   : > { %v1591_v9 = vmax.f32 %v1590_v6, 1e-24  ;;  %2367 = vmatpush3.bf16.msra.mxu0 %v3082_v20 }
 0x528   : > { %2520 = vrsqrt.f32 %v1514_v60  ;;  %2368 = vmatprep.subr.bf16.mxu0 %v2605_v4 }
 0x529   : > { %v2515_v62 = vpop.eup %2514  ;;  %2522 = vrsqrt.f32 %v1591_v9 }
 0x52a   : > { %v1521_v0 = vmul.f32 %v2515_v62, %v2976_v25 }
 0x52b   : > { %2369 = vmatpush3.bf16.msra.mxu0 %v3089_v21 }
 0x52c   : > { %v1594_v1 = vpack.c.bf16 %v1521_v0, %v1520_v63  ;;  %2402 = vmatprep.subr.bf16.mxu0 %v2605_v4 }
 0x52d   : > { %v2517_v2 = vpop.eup %2516 }
 0x52e   : > { %2343 = vmatmul.mubr.bf16.vlgmr.msra.gmra.mxu1 %v1594_v1  ;;  %v1522_v7 = vmul.f32 %v2517_v2, %v2980_v31 }
 0x52f   : > { %2383 = vmatpush3.bf16.msra.mxu1 %v2960_v56  ;;  %2346 = vmatprep.mubr.msk.bf16.mxu1 %vm2606_vm3, %v2605_v4 }
 0x530   : > { %2384 = vmatprep.subr.bf16.mxu1 %v2605_v4 }
 0x531   : > { %v2519_v5 = vpop.eup %2518 }
 0x532   : > { %v1523_v8 = vmul.f32 %v2519_v5, %v1493_v39 }
 0x533   : > { %2385 = vmatpush3.bf16.msra.mxu1 %v2966_v34 }
 0x534   : > { %2386 = vmatprep.subr.bf16.mxu1 %v2605_v4  ;;  %v1595_v10 = vpack.c.bf16 %v1523_v8, %v1522_v7 }
 0x535   : > { %v2521_v11 = vpop.eup %2520 }
 0x536   : > { %2347 = vmatmul.mubr.bf16.gmra.mxu1 %v1595_v10  ;;  %v1524_v56 = vmul.f32 %v2521_v11, %v1494_v44  ;;  %v2523_v34 = vpop.eup %2522 }
 0x537   : > { %2387 = vmatpush3.bf16.msra.mxu1 %v2987_v40  ;;  %2350 = vmatprep.mubr.msk.bf16.mxu1 %vm2606_vm3, %v2605_v4  ;;  %v1593_v13 = vmul.f32 %v2523_v34, %v2991_v43 }
 0x538   : > { %2388 = vmatprep.subr.bf16.mxu1 %v2605_v4  ;;  %v1596_v12 = vpack.c.bf16 %v1524_v56, %v1524_v56 }
 0x539   : > { %v1855_v14 = vpack.c.bf16 %v1593_v13, %v1593_v13 }
 0x53b   : > { %2389 = vmatpush3.bf16.msra.mxu1 %v2483_v45 }
 0x53c   : > { %2390 = vmatprep.subr.bf16.mxu1 %v2605_v4 }
 0x53e   : > { %2351 = vmatmul.mubr.bf16.gmra.mxu1 %v1596_v12 }
 0x53f   : > { %2391 = vmatpush3.bf16.msra.mxu1 %v2484_v3  ;;  %2398 = vmatprep.mubr.msk.bf16.mxu1 %vm2606_vm3, %v2605_v4 }
 0x540   : > { %2392 = vmatprep.subr.bf16.mxu1 %v2605_v4 }
 0x543   : > { %2393 = vmatpush3.bf16.msra.mxu1 %v2485_v48 }
 0x544   : > { %2394 = vmatprep.subr.bf16.mxu1 %v2605_v4 }
 0x547   : > { %2395 = vmatpush3.bf16.msra.mxu1 %v2486_v49 }
 0x548   : > { %2396 = vmatprep.subr.bf16.mxu1 %v2605_v4 }
 0x54b   : > { %2397 = vmatpush3.bf16.msra.mxu1 %v2487_v50 }
 0x54e   : > { %2399 = vmatmul.mubr.bf16.vlgmr.msra.gmra.mxu1 %v1855_v14 }
 0x5ee   : > { %v1685_v23 = vpop.f32.mrf.mxu1 }
 0x5ef   : > { %v1686_v24 = vadd.f32 %v2119_v22, %v1685_v23 }
 0x5f0   : > { %v2344_v25 = vpop.f32.mrf.mxu1 }
 0x5f1   : > { %v1712_v26 = vmin.f32 %v1686_v24, 0.0  ;;  %vm1707_vm7 = vcmp.gt.f32.partialorder %v1686_v24, 0.0 }
 0x5f2   : > { %v1688_v27 = vpop.f32.mrf.mxu1 }
 0x5f3   : > { %v1717_v28 = vmul.f32 1.442695, %v1712_v26  ;;  %v1689_v29 = vadd.f32 %v2119_v22, %v1688_v27 }
 0x5f4   : > { %v2345_v31 = vpop.f32.mrf.mxu1 }
 0x5f5   : > { %2524 = vpow2.f32 %v1717_v28  ;;  %v1713_v35 = vmin.f32 %v1689_v29, 0.0  ;;  %vm1708_vm8 = vcmp.gt.f32.partialorder %v1689_v29, 0.0 }
 0x5f6   : > { %v1693_v36 = vpop.f32.mrf.mxu1 }
 0x5f7   : > { %v1719_v37 = vmul.f32 1.442695, %v1713_v35  ;;  %v1694_v38 = vadd.f32 %v2119_v22, %v1693_v36 }
 0x5f8   : > { %v2348_v39 = vpop.f32.mrf.mxu1 }
 0x5f9   : > { %2526 = vpow2.f32 %v1719_v37  ;;  %v1714_v40 = vmin.f32 %v1694_v38, 0.0  ;;  %vm1709_vm9 = vcmp.gt.f32.partialorder %v1694_v38, 0.0 }
 0x5fa   : > { %v1696_v41 = vpop.f32.mrf.mxu1 }
 0x5fb   : > { %v1721_v30 = vmul.f32 1.442695, %v1714_v40  ;;  %v1697_v42 = vadd.f32 %v2119_v22, %v1696_v41 }
 0x5fc   : > { %v2349_v43 = vpop.f32.mrf.mxu1 }
 0x5fd   : > { %2528 = vpow2.f32 %v1721_v30  ;;  %v1715_v44 = vmin.f32 %v1697_v42, 0.0  ;;  %vm1710_vm10 = vcmp.gt.f32.partialorder %v1697_v42, 0.0 }
 0x5fe   : > { %v1701_v45 = vpop.f32.mrf.mxu1 }
 0x5ff   : > { %v1723_v46 = vmul.f32 1.442695, %v1715_v44  ;;  %v1702_v47 = vadd.f32 %v2119_v22, %v1701_v45 }
 0x600   : > { %v2352_v3 = vpop.f32.mrf.mxu1 }
 0x601   : > { %2530 = vpow2.f32 %v1723_v46  ;;  %v1716_v48 = vmin.f32 %v1702_v47, 0.0  ;;  %vm1711_vm11 = vcmp.gt.f32.partialorder %v1702_v47, 0.0 }
 0x602   : > { %v2525_v49 = vpop.eup %2524  ;;  %v1704_v50 = vpop.f32.mrf.mxu1 }
 0x603   : > { %v1725_v51 = vmul.f32 1.442695, %v1716_v48  ;;  %v2128_v52 = vadd.f32 -1.0, %v2525_v49 }
 0x604   : > { %v2353_v32 = vpop.f32.mrf.mxu1 }
 0x605   : > { %2532 = vpow2.f32 %v1725_v51  ;;  %v1732_v55 = vsel %vm1707_vm7, %v1686_v24, %v2128_v52 }
 0x606   : > { %v2527_v53 = vpop.eup %2526 }
 0x607   : > { %v2129_v54 = vadd.f32 -1.0, %v2527_v53 }
 0x609   : > { %v1733_v57 = vsel %vm1708_vm8, %v1689_v29, %v2129_v54 }
 0x60a   : > { %v2529_v58 = vpop.eup %2528  ;;  %v1737_v59 = vpack.c.bf16 %v1733_v57, %v1732_v55 }
 0x60b   : > { %v2130_v60 = vadd.f32 -1.0, %v2529_v58 }
 0x60c   : > { %2371 = vmatmul.mubr.bf16.vlgmr.msra.gmra.mxu0 %v1737_v59 }
 0x60d   : > { %2403 = vmatpush3.bf16.msra.mxu0 %v3020_v33  ;;  %2374 = vmatprep.mubr.msk.bf16.mxu0 %vm2606_vm3, %v2605_v4  ;;  %v1734_v5 = vsel %vm1709_vm9, %v1694_v38, %v2130_v60 }
 0x60e   : > { %v2531_v61 = vpop.eup %2530  ;;  %v1890_v62 = vpop.f32.mrf.mxu1  ;;  %2404 = vmatprep.subr.bf16.mxu0 %v2605_v4 }
 0x60f   : > { %v1891_v63 = vadd.f32 %v2119_v22, %v1890_v62  ;;  %v2131_v0 = vadd.f32 -1.0, %v2531_v61 }
 0x610   : > { %v2400_v1 = vpop.f32.mrf.mxu1 }
 0x611   : > { %v1897_v2 = vmin.f32 %v1891_v63, 0.0  ;;  %2405 = vmatpush3.bf16.msra.mxu0 %v3047_v15  ;;  %v1735_v6 = vsel %vm1710_vm10, %v1697_v42, %v2131_v0  ;;  %vm1896_vm12 = vcmp.gt.f32.partialorder %v1891_v63, 0.0 }
 0x612   : > { %v2533_v7 = vpop.eup %2532  ;;  %v1893_v33 = vpop.f32.mrf.mxu1  ;;  %2406 = vmatprep.subr.bf16.mxu0 %v2605_v4  ;;  %v1738_v8 = vpack.c.bf16 %v1735_v6, %v1734_v5 }
 0x613   : > { %v1898_v9 = vmul.f32 1.442695, %v1897_v2  ;;  %v2132_v10 = vadd.f32 -1.0, %v2533_v7 }
 0x614   : > { %v2401_v11 = vpop.f32.mrf.mxu1  ;;  %2375 = vmatmul.mubr.bf16.gmra.mxu0 %v1738_v8 }
 0x615   : > { %2534 = vpow2.f32 %v1898_v9  ;;  %2407 = vmatpush3.bf16.msra.mxu0 %v3054_v16  ;;  %2378 = vmatprep.mubr.msk.bf16.mxu0 %vm2606_vm3, %v2605_v4  ;;  %v1736_v56 = vsel %vm1711_vm11, %v1702_v47, %v2132_v10  ;;  %v2133_v16 = vld [vmem:[%s3197_s19] ss:$0 sm:$0xff] }
 0x616   : > { %2408 = vmatprep.subr.bf16.mxu0 %v2605_v4  ;;  %v1739_v12 = vpack.c.bf16 %v1736_v56, %v1736_v56 }
 0x619   : > { %2409 = vmatpush3.bf16.msra.mxu0 %v3061_v17 }
 0x61a   : > { %2410 = vmatprep.subr.bf16.mxu0 %v2605_v4 }
 0x61c   : > { %2379 = vmatmul.mubr.bf16.gmra.mxu0 %v1739_v12 }
 0x61d   : > { %2411 = vmatpush3.bf16.msra.mxu0 %v3068_v18  ;;  %2418 = vmatprep.mubr.msk.bf16.mxu0 %vm2606_vm3, %v2605_v4 }
 0x61e   : > { %2412 = vmatprep.subr.bf16.mxu0 %v2605_v4 }
 0x621   : > { %2413 = vmatpush3.bf16.msra.mxu0 %v3075_v19 }
 0x622   : > { %v2535_v34 = vpop.eup %2534  ;;  %2414 = vmatprep.subr.bf16.mxu0 %v2605_v4 }
 0x623   : > { %v2142_v13 = vadd.f32 -1.0, %v2535_v34 }
 0x625   : > { %2415 = vmatpush3.bf16.msra.mxu0 %v3082_v20  ;;  %v1901_v14 = vsel %vm1896_vm12, %v1891_v63, %v2142_v13 }
 0x626   : > { %2416 = vmatprep.subr.bf16.mxu0 %v2605_v4  ;;  %v1902_v15 = vpack.c.bf16 %v1901_v14, %v1901_v14 }
 0x629   : > { %2417 = vmatpush3.bf16.msra.mxu0 %v3089_v21 }
 0x62c   : > { %2419 = vmatmul.mubr.bf16.vlgmr.msra.gmra.mxu0 %v1902_v15 }
 0x6cc   : > { %v1828_v17 = vpop.f32.mrf.mxu0 }
 0x6cd   : > { %v1829_v18 = vadd.f32 %v2133_v16, %v1828_v17 }
 0x6ce   : > { %v2372_v19 = vpop.f32.mrf.mxu0 }
 0x6cf   : > { %1850 = vst [vmem:[#allocation4] sm:$0xff] %v1829_v18 }
 0x6d0   : > { %v1831_v22 = vpop.f32.mrf.mxu0 }
 0x6d1   : > { %v1832_v23 = vadd.f32 %v2133_v16, %v1831_v22 }
 0x6d2   : > { %v2373_v24 = vpop.f32.mrf.mxu0 }
 0x6d3   : > { %1851 = vst [vmem:[#allocation4 + $0x8] sm:$0xff] %v1832_v23 }
 0x6d4   : > { %v1836_v20 = vpop.f32.mrf.mxu0 }
 0x6d5   : > { %v1837_v25 = vadd.f32 %v2133_v16, %v1836_v20 }
 0x6d6   : > { %v2376_v4 = vpop.f32.mrf.mxu0 }
 0x6d7   : > { %1852 = vst [vmem:[#allocation4 + $0x10] sm:$0xff] %v1837_v25 }
 0x6d8   : > { %v1839_v26 = vpop.f32.mrf.mxu0 }
 0x6d9   : > { %v1840_v21 = vadd.f32 %v2133_v16, %v1839_v26 }
 0x6da   : > { %v2377_v27 = vpop.f32.mrf.mxu0 }
 0x6db   : > { %1853 = vst [vmem:[#allocation4 + $0x18] sm:$0xff] %v1840_v21 }
 0x6dc   : > { %v1844_v28 = vpop.f32.mrf.mxu0 }
 0x6dd   : > { %v1845_v29 = vadd.f32 %v2133_v16, %v1844_v28 }
 0x6de   : > { %v2380_v31 = vpop.f32.mrf.mxu0 }
 0x6df   : > { %1854 = vst [vmem:[#allocation4 + $0x20] sm:$0xff] %v1845_v29 }
 0x6e0   : > { %v1847_v35 = vpop.f32.mrf.mxu0 }
 0x6e2   : > { %v2381_v36 = vpop.f32.mrf.mxu0 }
 0x6ec   : > { %v1937_v37 = vpop.f32.mrf.mxu0 }
 0x6ed   : > { %v1938_v38 = vadd.f32 %v2133_v16, %v1937_v37 }
 0x6ee   : > { %v2420_v39 = vpop.f32.mrf.mxu0 }
 0x6ef   : > { %1943 = vst [vmem:[#allocation6] sm:$0xff] %v1938_v38 }
 0x6f0   : > { %v1940_v40 = vpop.f32.mrf.mxu0 }
 0x6f2   : > { %v2421_v41 = vpop.f32.mrf.mxu0 }
 0x6f3 PF: > { %p2430_p6 = scmp.eq.s32.totalorder %s2727_s25, 3  ;;  %s2607_s18 = smov [#allocation4]  }
 0x6f4   : > { %s1950_s20 = sshll.u32 %s2607_s18, 4  ;;  %s1951_s20 = int_to_ptr.vmem [resolvable:$true] %s1950_s20 }
 0x6f5   : > { %s2536_s21 = scalar_lea.vmem %s1951_s20, 640  ;;  %p2543_p10 = scmp.lt.s32.totalorder %s1951_s20, %s1951_s20 }
 0x6f6   : > { %p2537_p7 = scmp.ne.s32.totalorder %s1951_s20, %s2536_s21  ;;  %p2544_p11 = scmp.lt.s32.totalorder %s2536_s21, %s2536_s21 }
 0x6f8   : > { %p2538_p8 = pnand %p2537_p7, %p2430_p6  ;;  %p2545_p12 = por %p2544_p11, %p2543_p10 }
 0x6fa   : > { %p2539_p9 = pneg %p2538_p8 }
 0x6fc   : > { %p2546_p13 = pnand %p2545_p12, %p2539_p9 }
 0x6fe   : > { %2549 = shalt.err (!%p2546_p13)
}
 0x6ff   : > { %s2608_s2 = smov 128   ;;  %s2609_s27 = smov 8  }
 0x700   : > { %s3198_s0 = sld [smem:[#allocation22_spill]]  ;;  %s2610_s4 = smov [#allocation6]  }
 0x701   : > { %s1964_s30 = sshll.u32 %s2610_s4, 4  ;;  %s1965_s30 = int_to_ptr.vmem [resolvable:$true] %s1964_s30 }
 0x702   : > { %s2560_s5 = scalar_lea.vmem %s1965_s30, 128  ;;  %p2567_p3 = scmp.lt.s32.totalorder %s1965_s30, %s1965_s30 }
 0x703   : > { %p2561_p0 = scmp.ne.s32.totalorder %s1965_s30, %s2560_s5  ;;  %p2568_p4 = scmp.lt.s32.totalorder %s2560_s5, %s2560_s5 }
 0x705   : > { %p2562_p1 = pnand %p2561_p0, %p2430_p6  ;;  %p2569_p5 = por %p2568_p4, %p2567_p3 }
 0x706   : > { %2423 = dma.vmem_to_hbm [thread:$0]  (%p2430_p6), %s1951_s20, 640, %s3198_s0, [#allocation5], %s2608_s2, %s2608_s2, %s2609_s27  }
 0x707   : > { %p2563_p2 = pneg %p2562_p1 }
 0x709   : > { %p2570_p7 = pnand %p2569_p5, %p2563_p2 }
 0x70b   : > { %2573 = shalt.err (!%p2570_p7)
}
 0x70c   : > { %s3199_s26 = sld [smem:[#allocation23_spill]] }
 0x712   : > { %2425 = dma.vmem_to_hbm [thread:$0]  (%p2430_p6), %s1965_s30, 128, %s3199_s26, [#allocation7]  }
 0x713   : > { %2589 = dma.done.wait (%p2430_p6), [#allocation5], 640  }
 0x714   : > { %2591 = vsyncadd (%p2430_p6), [#allocation5], 4294966656 }
 0x715   : > { %2593 = dma.done.wait (%p2430_p6), [#allocation7], 128  }
 0x716   : > { %2595 = vsyncadd (%p2430_p6), [#allocation7], 4294967168 }
 0x717 PF: > { %s3200_s15 = sld [smem:[#allocation10_spill]] }
 0x71d   : > { %s34_s2 = sadd.s32 1, %s3200_s15  }
 0x71e   : > { %p31_p8 = scmp.ge.s32.totalorder %s34_s2, 6  }
 0x720   :  { %33 = sbr.rel (!%p31_p8) target bundleno = 16 (0x10), region = 155 }
 0x725   :  { %1981 = vsyncpa [#allocation5], 1 }
 0x726   :  { %1983 = vsyncpa [#allocation5 + $0x1], 1 }
 0x727   :  { %1984 = vsyncpa [#allocation7], 1 }

</bundles_post_ra>
